<compile_context>
chip_gen: v7x
topology: tpu7x:2x2x1
jax: 0.10.0
libtpu: 0.0.40
codegen_flags: <defaults>
</compile_context>

<pallas_src>
import jax
import jax.numpy as jnp
from jax.experimental import pallas as pl
from jax.experimental.pallas import tpu as pltpu

EMB = 50  # embedding width, fixed by the Conv2d kernels (k, 50)


def _chunk_conv_weight(w, C):
    """Fold a (kH, 50) conv kernel into a chunk-local dense matmul weight.

    For a chunk that needs conv outputs q in [0, C+3) from input rows
    h in [0, C+5):  Wd[h*50 + e, q] = w[h - q, e] if 0 <= h - q < kH else 0,
    so (x_chunk.reshape(B, (C+5)*50) @ Wd)[b, q] is the conv at position s+q.
    Columns that would need rows >= C+5 are left incomplete; they are never
    read by the pooling below.
    """
    kH, E = w.shape
    R = C + 5            # input rows per chunk
    Wc = C + 3           # conv outputs kept per chunk (uniform across branches)
    Wd = jnp.zeros((R, E, Wc), jnp.float32)
    for dh in range(kH):
        qmax = min(Wc, R - dh)
        q = jnp.arange(qmax)
        Wd = Wd.at[q + dh, :, q].set(jnp.broadcast_to(w[dh], (qmax, E)))
    return Wd.reshape(R * E, Wc)


def _chunk_fc1_slices(w1_branch, starts, C, fc1_in):
    """Stack per-chunk (C, 120) row-slices of a branch's FC1 weight.

    The tail chunk starts at fc1_in - C (overlapping the previous chunk); its
    duplicated leading rows are zeroed so the chunk-wise accumulation counts
    every pooled position exactly once.
    """
    n = len(starts)
    overlap = n * C - fc1_in
    slices = []
    for ci, s in enumerate(starts):
        sl = w1_branch[s:s + C]
        if ci == n - 1 and overlap > 0:
            sl = sl.at[:overlap].set(0.0)
        slices.append(sl)
    return jnp.stack(slices)          # (n_chunks, C, 120)


def _make_kernel(chunk_starts, C):
    """Kernel factory closing over the static chunk schedule."""
    Wc = C + 3

    def kernel(cb_ref, x_ref, wconv_ref, w1a_ref, w1b_ref, w1c_ref, b1_ref,
               w2_ref, b2_ref, w3_ref, b3_ref, o_ref):
        B = x_ref.shape[0]
        wconv = wconv_ref[...]                          # ((C+5)*50, 3*(C+3)) bf16
        bias_a = cb_ref[0]                              # scalar conv biases (SMEM)
        bias_b = cb_ref[1]
        bias_c = cb_ref[2]

        def relu_pool(conv, col0, bias, pool_k):
            # conv bias + ReLU, then MaxPool2d((pool_k,1), stride 1), all lane-major.
            r = jnp.maximum(conv[:, col0:col0 + Wc] + bias, 0.0)
            p = r[:, 0:C]
            for q in range(1, pool_k):
                p = jnp.maximum(p, r[:, q:q + C])
            return p.astype(jnp.bfloat16)               # (B, C)

        h1 = jnp.zeros((B, 120), jnp.float32)
        for ci, s in enumerate(chunk_starts):           # static, fully unrolled
            # bf16 cast happens in-kernel: HBM only ever sees the f32 x once.
            xc = x_ref[:, s * EMB:(s + C + 5) * EMB].astype(jnp.bfloat16)
            conv = jnp.dot(xc, wconv, preferred_element_type=jnp.float32)
            pa = relu_pool(conv, 0, bias_a, 4)          # conv1_a + pool(4)
            pb = relu_pool(conv, Wc, bias_b, 3)         # conv1_b + pool(3)
            pc = relu_pool(conv, 2 * Wc, bias_c, 2)     # conv1_c + pool(2)
            # FC1 accumulated per chunk (rows of W1 matching this chunk).
            h1 = h1 + jnp.dot(pa, w1a_ref[ci], preferred_element_type=jnp.float32)
            h1 = h1 + jnp.dot(pb, w1b_ref[ci], preferred_element_type=jnp.float32)
            h1 = h1 + jnp.dot(pc, w1c_ref[ci], preferred_element_type=jnp.float32)

        h1 = jnp.maximum(h1 + b1_ref[...], 0.0).astype(jnp.bfloat16)    # (B,120)
        h2 = jnp.maximum(
            jnp.dot(h1, w2_ref[...], preferred_element_type=jnp.float32)
            + b2_ref[...], 0.0).astype(jnp.bfloat16)                    # (B,50)
        out = (jnp.dot(h2, w3_ref[...], preferred_element_type=jnp.float32)
               + b3_ref[...])                                           # (B,n_class)
        o_ref[...] = out.astype(o_ref.dtype)

    return kernel


def cnn_kim_forward(x, params, *, batch_block=128, seq_chunk=64):
    """x: (N, H, 50) float32 (PyTorch (N,1,H,50) with the channel squeezed)."""
    N, H, W = x.shape
    assert W == EMB
    assert batch_block % 16 == 0, "batch block must be a multiple of 16 (bf16 packing)"
    fc1_in = H - 5
    n_class = params["w3"].shape[1]

    # ---- batch blocking: big M per matmul, but keep the double-buffered f32
    # x block within ~32 MiB of VMEM (matters for long-sequence datasets / v7x).
    B = batch_block
    while B > 16 and 2 * B * H * EMB * 4 > 32 * 1024 * 1024:
        B //= 2
    B = min(B, max(16, -(-N // 16) * 16))     # don't over-pad tiny batches
    grid = (pl.cdiv(N, B),)                   # uneven last block handled by Pallas

    # ---- sequence chunking schedule (static).
    C = min(seq_chunk, fc1_in)
    n_chunks = -(-fc1_in // C)
    starts = tuple([i * C for i in range(n_chunks - 1)] + [fc1_in - C])

    # ---- host-side weight prep (weights only; x is untouched except a free reshape).
    bf = lambda a: a.astype(jnp.bfloat16)
    wconv = bf(jnp.concatenate(
        [_chunk_conv_weight(params["wa"], C),
         _chunk_conv_weight(params["wb"], C),
         _chunk_conv_weight(params["wc"], C)], axis=1))      # ((C+5)*50, 3*(C+3))
    w1a_st = bf(_chunk_fc1_slices(params["w1"][0:fc1_in], starts, C, fc1_in))
    w1b_st = bf(_chunk_fc1_slices(params["w1"][fc1_in:2 * fc1_in], starts, C, fc1_in))
    w1c_st = bf(_chunk_fc1_slices(params["w1"][2 * fc1_in:3 * fc1_in], starts, C, fc1_in))
    w2 = bf(params["w2"])
    w3 = bf(params["w3"])
    conv_bias = jnp.stack([params["ba"].reshape(()),
                           params["bb"].reshape(()),
                           params["bc"].reshape(())]).astype(jnp.float32)   # (3,)

    x_flat = x.reshape(N, H * EMB)            # free reshape, stays float32 in HBM

    kernel = _make_kernel(starts, C)

    def const2(shape):   # weight / bias resident across all grid steps
        return pl.BlockSpec(shape, lambda i: (0, 0))

    out = pl.pallas_call(
        kernel,
        out_shape=jax.ShapeDtypeStruct((N, n_class), jnp.float32),
        grid=grid,
        in_specs=[
            pl.BlockSpec(memory_space=pltpu.MemorySpace.SMEM),       # conv biases
            pl.BlockSpec((B, H * EMB), lambda i: (i, 0)),            # x, B rows/step
            const2(((C + 5) * EMB, 3 * (C + 3))),                    # combined conv W
            pl.BlockSpec((n_chunks, C, 120), lambda i: (0, 0, 0)),   # fc1 chunks (a)
            pl.BlockSpec((n_chunks, C, 120), lambda i: (0, 0, 0)),   # fc1 chunks (b)
            pl.BlockSpec((n_chunks, C, 120), lambda i: (0, 0, 0)),   # fc1 chunks (c)
            const2((1, 120)),                                        # b1
            const2((120, 50)), const2((1, 50)),                      # fc2
            const2((50, n_class)), const2((1, n_class)),             # fc3
        ],
        out_specs=pl.BlockSpec((B, n_class), lambda i: (i, 0)),
        compiler_params=pltpu.CompilerParams(
            dimension_semantics=("parallel",),
            vmem_limit_bytes=48 * 1024 * 1024),   # safe on v5e/v6e; <=56 MiB for v7x
    )(conv_bias, x_flat, wconv, w1a_st, w1b_st, w1c_st,
      params["b1"], w2, params["b2"], w3, params["b3"])
    return out


def init_params(key, fc1_in, n_class):
    ks = jax.random.split(key, 12)

    def u(k, shape, scale=0.1):
        return jax.random.uniform(k, shape, jnp.float32, -scale, scale)

    return dict(
        wa=u(ks[0], (3, EMB)), ba=u(ks[1], (1, 1)),
        wb=u(ks[2], (4, EMB)), bb=u(ks[3], (1, 1)),
        wc=u(ks[4], (5, EMB)), bc=u(ks[5], (1, 1)),
        w1=u(ks[6], (3 * fc1_in, 120)), b1=u(ks[7], (1, 120)),
        w2=u(ks[8], (120, 50)), b2=u(ks[9], (1, 50)),
        w3=u(ks[10], (50, n_class)), b3=u(ks[11], (1, n_class)),
    )


def ref_forward(x, params):
    """Pure-JAX reference mirroring the PyTorch forward (and the kernel's
    bf16-operand / f32-accumulate dtype policy)."""
    N, H, _ = x.shape
    fc1_in = H - 5
    xb = x.astype(jnp.bfloat16)
    bf = lambda a: a.astype(jnp.bfloat16)

    def conv_relu_pool(w, b, pool_k):
        kH = w.shape[0]
        L = H - kH + 1
        wb_ = bf(w)
        acc = jnp.zeros((N, L), jnp.float32)
        for dh in range(kH):
            acc = acc + jnp.einsum('nhw,w->nh', xb[:, dh:dh + L, :], wb_[dh],
                                   preferred_element_type=jnp.float32)
        c = jax.nn.relu(acc + b[0, 0])
        p = c[:, 0:fc1_in]
        for q in range(1, pool_k):
            p = jnp.maximum(p, c[:, q:q + fc1_in])
        return bf(p)

    fa = conv_relu_pool(params["wa"], params["ba"], 4)
    fb = conv_relu_pool(params["wb"], params["bb"], 3)
    fc = conv_relu_pool(params["wc"], params["bc"], 2)

    h1 = (jnp.dot(fa, bf(params["w1"][:fc1_in]), preferred_element_type=jnp.float32)
          + jnp.dot(fb, bf(params["w1"][fc1_in:2 * fc1_in]), preferred_element_type=jnp.float32)
          + jnp.dot(fc, bf(params["w1"][2 * fc1_in:]), preferred_element_type=jnp.float32)
          + params["b1"])
    h1 = bf(jax.nn.relu(h1))
    h2 = bf(jax.nn.relu(
        jnp.dot(h1, bf(params["w2"]), preferred_element_type=jnp.float32)
        + params["b2"]))
    return (jnp.dot(h2, bf(params["w3"]), preferred_element_type=jnp.float32)
            + params["b3"])


if __name__ == "__main__":
    # Small stand-in shapes (real ag_news has H=245 -> fc1_in=240, n_class=4).
    # N=21 with batch_block=16 exercises the multi-step grid plus an uneven
    # final batch block; seq_chunk=6 on fc1_in=16 exercises the multi-chunk
    # conv path including the overlapping tail chunk.
    N, H = 21, 21
    fc1_in, n_class = H - 5, 4

    key = jax.random.PRNGKey(0)
    kx, kp = jax.random.split(key)
    x = jax.random.normal(kx, (N, H, EMB), jnp.float32)
    params = init_params(kp, fc1_in, n_class)

    out = cnn_kim_forward(x, params, batch_block=16, seq_chunk=6)
    jax.block_until_ready(out)

    ref = ref_forward(x, params)
    assert out.shape == (N, n_class), out.shape
    assert jnp.allclose(out, ref, atol=2e-2, rtol=2e-2), (
        float(jnp.max(jnp.abs(out - ref))), out, ref)
    print("KERNEL_OK")
</pallas_src>

<mosaic_0001>
module attributes {stable_mosaic.version = 11 : i64} {
  func.func @kernel(%arg0: i32, %arg1: memref<3xf32, #tpu.memory_space<smem>>, %arg2: memref<16x1050xf32, #tpu.memory_space<vmem>>, %arg3: memref<550x27xbf16, #tpu.memory_space<vmem>>, %arg4: memref<3x6x120xbf16, #tpu.memory_space<vmem>>, %arg5: memref<3x6x120xbf16, #tpu.memory_space<vmem>>, %arg6: memref<3x6x120xbf16, #tpu.memory_space<vmem>>, %arg7: memref<1x120xf32, #tpu.memory_space<vmem>>, %arg8: memref<120x50xbf16, #tpu.memory_space<vmem>>, %arg9: memref<1x50xf32, #tpu.memory_space<vmem>>, %arg10: memref<50x4xbf16, #tpu.memory_space<vmem>>, %arg11: memref<1x4xf32, #tpu.memory_space<vmem>>, %arg12: memref<16x4xf32, #tpu.memory_space<vmem>>) attributes {dimension_semantics = [#tpu.dimension_semantics<parallel>], iteration_bounds = array<i64: 2>, scalar_prefetch = 0 : i64, scratch_operands = 0 : i64, tpu.core_type = #tpu.core_type<tc>, window_params = [{transform_indices = @transform_0, window_bounds = array<i64: 3>}, {transform_indices = @transform_1, window_bounds = array<i64: 16, 1050>}, {pipeline_mode = #tpu.pipeline_mode<synchronous>, transform_indices = @transform_2, window_bounds = array<i64: 550, 27>}, {pipeline_mode = #tpu.pipeline_mode<synchronous>, transform_indices = @transform_3, window_bounds = array<i64: 3, 6, 120>}, {pipeline_mode = #tpu.pipeline_mode<synchronous>, transform_indices = @transform_4, window_bounds = array<i64: 3, 6, 120>}, {pipeline_mode = #tpu.pipeline_mode<synchronous>, transform_indices = @transform_5, window_bounds = array<i64: 3, 6, 120>}, {pipeline_mode = #tpu.pipeline_mode<synchronous>, transform_indices = @transform_6, window_bounds = array<i64: 1, 120>}, {pipeline_mode = #tpu.pipeline_mode<synchronous>, transform_indices = @transform_7, window_bounds = array<i64: 120, 50>}, {pipeline_mode = #tpu.pipeline_mode<synchronous>, transform_indices = @transform_8, window_bounds = array<i64: 1, 50>}, {pipeline_mode = #tpu.pipeline_mode<synchronous>, transform_indices = @transform_9, window_bounds = array<i64: 50, 4>}, {pipeline_mode = #tpu.pipeline_mode<synchronous>, transform_indices = @transform_10, window_bounds = array<i64: 1, 4>}, {transform_indices = @transform_11, window_bounds = array<i64: 16, 4>}]} {
    %c0 = arith.constant 0 : index
    %c0_0 = arith.constant 0 : index
    %0 = vector.load %arg3[%c0, %c0_0] : memref<550x27xbf16, #tpu.memory_space<vmem>>, vector<550x27xbf16>
    %c0_1 = arith.constant 0 : index
    %1 = memref.load %arg1[%c0_1] : memref<3xf32, #tpu.memory_space<smem>>
    %c1 = arith.constant 1 : index
    %2 = memref.load %arg1[%c1] : memref<3xf32, #tpu.memory_space<smem>>
    %c2 = arith.constant 2 : index
    %3 = memref.load %arg1[%c2] : memref<3xf32, #tpu.memory_space<smem>>
    %cst = arith.constant 0.000000e+00 : f32
    %4 = vector.broadcast %cst : f32 to vector<16x120xf32>
    %c0_2 = arith.constant 0 : index
    %c0_3 = arith.constant 0 : index
    %5 = vector.load %arg2[%c0_2, %c0_3] : memref<16x1050xf32, #tpu.memory_space<vmem>>, vector<16x550xf32>
    %6 = arith.truncf %5 : vector<16x550xf32> to vector<16x550xbf16>
    %cst_4 = arith.constant dense<0.000000e+00> : vector<16x27xf32>
    %7 = tpu.matmul %6, %0, %cst_4 {dimension_numbers = #tpu.dot_dimension_numbers<[1], [0], [0], [1], [0, 0, 1, 1], [], []>} : vector<16x550xbf16>, vector<550x27xbf16>, vector<16x27xf32> -> vector<16x27xf32>
    %8 = vector.extract_strided_slice %7 {offsets = [0, 0], sizes = [16, 9], strides = [1, 1]} : vector<16x27xf32> to vector<16x9xf32>
    %9 = vector.broadcast %1 : f32 to vector<16x9xf32>
    %10 = arith.addf %8, %9 : vector<16x9xf32>
    %cst_5 = arith.constant 0.000000e+00 : f32
    %11 = vector.broadcast %cst_5 : f32 to vector<16x9xf32>
    %12 = arith.maximumf %10, %11 : vector<16x9xf32>
    %13 = vector.extract_strided_slice %12 {offsets = [0, 0], sizes = [16, 6], strides = [1, 1]} : vector<16x9xf32> to vector<16x6xf32>
    %14 = vector.extract_strided_slice %12 {offsets = [0, 1], sizes = [16, 6], strides = [1, 1]} : vector<16x9xf32> to vector<16x6xf32>
    %15 = arith.maximumf %13, %14 : vector<16x6xf32>
    %16 = vector.extract_strided_slice %12 {offsets = [0, 2], sizes = [16, 6], strides = [1, 1]} : vector<16x9xf32> to vector<16x6xf32>
    %17 = arith.maximumf %15, %16 : vector<16x6xf32>
    %18 = vector.extract_strided_slice %12 {offsets = [0, 3], sizes = [16, 6], strides = [1, 1]} : vector<16x9xf32> to vector<16x6xf32>
    %19 = arith.maximumf %17, %18 : vector<16x6xf32>
    %20 = arith.truncf %19 : vector<16x6xf32> to vector<16x6xbf16>
    %21 = vector.extract_strided_slice %7 {offsets = [0, 9], sizes = [16, 9], strides = [1, 1]} : vector<16x27xf32> to vector<16x9xf32>
    %22 = vector.broadcast %2 : f32 to vector<16x9xf32>
    %23 = arith.addf %21, %22 : vector<16x9xf32>
    %cst_6 = arith.constant 0.000000e+00 : f32
    %24 = vector.broadcast %cst_6 : f32 to vector<16x9xf32>
    %25 = arith.maximumf %23, %24 : vector<16x9xf32>
    %26 = vector.extract_strided_slice %25 {offsets = [0, 0], sizes = [16, 6], strides = [1, 1]} : vector<16x9xf32> to vector<16x6xf32>
    %27 = vector.extract_strided_slice %25 {offsets = [0, 1], sizes = [16, 6], strides = [1, 1]} : vector<16x9xf32> to vector<16x6xf32>
    %28 = arith.maximumf %26, %27 : vector<16x6xf32>
    %29 = vector.extract_strided_slice %25 {offsets = [0, 2], sizes = [16, 6], strides = [1, 1]} : vector<16x9xf32> to vector<16x6xf32>
    %30 = arith.maximumf %28, %29 : vector<16x6xf32>
    %31 = arith.truncf %30 : vector<16x6xf32> to vector<16x6xbf16>
    %32 = vector.extract_strided_slice %7 {offsets = [0, 18], sizes = [16, 9], strides = [1, 1]} : vector<16x27xf32> to vector<16x9xf32>
    %33 = vector.broadcast %3 : f32 to vector<16x9xf32>
    %34 = arith.addf %32, %33 : vector<16x9xf32>
    %cst_7 = arith.constant 0.000000e+00 : f32
    %35 = vector.broadcast %cst_7 : f32 to vector<16x9xf32>
    %36 = arith.maximumf %34, %35 : vector<16x9xf32>
    %37 = vector.extract_strided_slice %36 {offsets = [0, 0], sizes = [16, 6], strides = [1, 1]} : vector<16x9xf32> to vector<16x6xf32>
    %38 = vector.extract_strided_slice %36 {offsets = [0, 1], sizes = [16, 6], strides = [1, 1]} : vector<16x9xf32> to vector<16x6xf32>
    %39 = arith.maximumf %37, %38 : vector<16x6xf32>
    %40 = arith.truncf %39 : vector<16x6xf32> to vector<16x6xbf16>
    %c0_8 = arith.constant 0 : index
    %c0_9 = arith.constant 0 : index
    %c0_10 = arith.constant 0 : index
    %41 = vector.load %arg4[%c0_8, %c0_9, %c0_10] : memref<3x6x120xbf16, #tpu.memory_space<vmem>>, vector<1x6x120xbf16>
    %42 = vector.shape_cast %41 : vector<1x6x120xbf16> to vector<6x120xbf16>
    %cst_11 = arith.constant dense<0.000000e+00> : vector<16x120xf32>
    %43 = tpu.matmul %20, %42, %cst_11 {dimension_numbers = #tpu.dot_dimension_numbers<[1], [0], [0], [1], [0, 0, 1, 1], [], []>} : vector<16x6xbf16>, vector<6x120xbf16>, vector<16x120xf32> -> vector<16x120xf32>
    %44 = arith.addf %4, %43 : vector<16x120xf32>
    %c0_12 = arith.constant 0 : index
    %c0_13 = arith.constant 0 : index
    %c0_14 = arith.constant 0 : index
    %45 = vector.load %arg5[%c0_12, %c0_13, %c0_14] : memref<3x6x120xbf16, #tpu.memory_space<vmem>>, vector<1x6x120xbf16>
    %46 = vector.shape_cast %45 : vector<1x6x120xbf16> to vector<6x120xbf16>
    %cst_15 = arith.constant dense<0.000000e+00> : vector<16x120xf32>
    %47 = tpu.matmul %31, %46, %cst_15 {dimension_numbers = #tpu.dot_dimension_numbers<[1], [0], [0], [1], [0, 0, 1, 1], [], []>} : vector<16x6xbf16>, vector<6x120xbf16>, vector<16x120xf32> -> vector<16x120xf32>
    %48 = arith.addf %44, %47 : vector<16x120xf32>
    %c0_16 = arith.constant 0 : index
    %c0_17 = arith.constant 0 : index
    %c0_18 = arith.constant 0 : index
    %49 = vector.load %arg6[%c0_16, %c0_17, %c0_18] : memref<3x6x120xbf16, #tpu.memory_space<vmem>>, vector<1x6x120xbf16>
    %50 = vector.shape_cast %49 : vector<1x6x120xbf16> to vector<6x120xbf16>
    %cst_19 = arith.constant dense<0.000000e+00> : vector<16x120xf32>
    %51 = tpu.matmul %40, %50, %cst_19 {dimension_numbers = #tpu.dot_dimension_numbers<[1], [0], [0], [1], [0, 0, 1, 1], [], []>} : vector<16x6xbf16>, vector<6x120xbf16>, vector<16x120xf32> -> vector<16x120xf32>
    %52 = arith.addf %48, %51 : vector<16x120xf32>
    %c0_20 = arith.constant 0 : index
    %c300 = arith.constant 300 : index
    %53 = vector.load %arg2[%c0_20, %c300] : memref<16x1050xf32, #tpu.memory_space<vmem>>, vector<16x550xf32>
    %54 = arith.truncf %53 : vector<16x550xf32> to vector<16x550xbf16>
    %cst_21 = arith.constant dense<0.000000e+00> : vector<16x27xf32>
    %55 = tpu.matmul %54, %0, %cst_21 {dimension_numbers = #tpu.dot_dimension_numbers<[1], [0], [0], [1], [0, 0, 1, 1], [], []>} : vector<16x550xbf16>, vector<550x27xbf16>, vector<16x27xf32> -> vector<16x27xf32>
    %56 = vector.extract_strided_slice %55 {offsets = [0, 0], sizes = [16, 9], strides = [1, 1]} : vector<16x27xf32> to vector<16x9xf32>
    %57 = vector.broadcast %1 : f32 to vector<16x9xf32>
    %58 = arith.addf %56, %57 : vector<16x9xf32>
    %cst_22 = arith.constant 0.000000e+00 : f32
    %59 = vector.broadcast %cst_22 : f32 to vector<16x9xf32>
    %60 = arith.maximumf %58, %59 : vector<16x9xf32>
    %61 = vector.extract_strided_slice %60 {offsets = [0, 0], sizes = [16, 6], strides = [1, 1]} : vector<16x9xf32> to vector<16x6xf32>
    %62 = vector.extract_strided_slice %60 {offsets = [0, 1], sizes = [16, 6], strides = [1, 1]} : vector<16x9xf32> to vector<16x6xf32>
    %63 = arith.maximumf %61, %62 : vector<16x6xf32>
    %64 = vector.extract_strided_slice %60 {offsets = [0, 2], sizes = [16, 6], strides = [1, 1]} : vector<16x9xf32> to vector<16x6xf32>
    %65 = arith.maximumf %63, %64 : vector<16x6xf32>
    %66 = vector.extract_strided_slice %60 {offsets = [0, 3], sizes = [16, 6], strides = [1, 1]} : vector<16x9xf32> to vector<16x6xf32>
    %67 = arith.maximumf %65, %66 : vector<16x6xf32>
    %68 = arith.truncf %67 : vector<16x6xf32> to vector<16x6xbf16>
    %69 = vector.extract_strided_slice %55 {offsets = [0, 9], sizes = [16, 9], strides = [1, 1]} : vector<16x27xf32> to vector<16x9xf32>
    %70 = vector.broadcast %2 : f32 to vector<16x9xf32>
    %71 = arith.addf %69, %70 : vector<16x9xf32>
    %cst_23 = arith.constant 0.000000e+00 : f32
    %72 = vector.broadcast %cst_23 : f32 to vector<16x9xf32>
    %73 = arith.maximumf %71, %72 : vector<16x9xf32>
    %74 = vector.extract_strided_slice %73 {offsets = [0, 0], sizes = [16, 6], strides = [1, 1]} : vector<16x9xf32> to vector<16x6xf32>
    %75 = vector.extract_strided_slice %73 {offsets = [0, 1], sizes = [16, 6], strides = [1, 1]} : vector<16x9xf32> to vector<16x6xf32>
    %76 = arith.maximumf %74, %75 : vector<16x6xf32>
    %77 = vector.extract_strided_slice %73 {offsets = [0, 2], sizes = [16, 6], strides = [1, 1]} : vector<16x9xf32> to vector<16x6xf32>
    %78 = arith.maximumf %76, %77 : vector<16x6xf32>
    %79 = arith.truncf %78 : vector<16x6xf32> to vector<16x6xbf16>
    %80 = vector.extract_strided_slice %55 {offsets = [0, 18], sizes = [16, 9], strides = [1, 1]} : vector<16x27xf32> to vector<16x9xf32>
    %81 = vector.broadcast %3 : f32 to vector<16x9xf32>
    %82 = arith.addf %80, %81 : vector<16x9xf32>
    %cst_24 = arith.constant 0.000000e+00 : f32
    %83 = vector.broadcast %cst_24 : f32 to vector<16x9xf32>
    %84 = arith.maximumf %82, %83 : vector<16x9xf32>
    %85 = vector.extract_strided_slice %84 {offsets = [0, 0], sizes = [16, 6], strides = [1, 1]} : vector<16x9xf32> to vector<16x6xf32>
    %86 = vector.extract_strided_slice %84 {offsets = [0, 1], sizes = [16, 6], strides = [1, 1]} : vector<16x9xf32> to vector<16x6xf32>
    %87 = arith.maximumf %85, %86 : vector<16x6xf32>
    %88 = arith.truncf %87 : vector<16x6xf32> to vector<16x6xbf16>
    %c1_25 = arith.constant 1 : index
    %c0_26 = arith.constant 0 : index
    %c0_27 = arith.constant 0 : index
    %89 = vector.load %arg4[%c1_25, %c0_26, %c0_27] : memref<3x6x120xbf16, #tpu.memory_space<vmem>>, vector<1x6x120xbf16>
    %90 = vector.shape_cast %89 : vector<1x6x120xbf16> to vector<6x120xbf16>
    %cst_28 = arith.constant dense<0.000000e+00> : vector<16x120xf32>
    %91 = tpu.matmul %68, %90, %cst_28 {dimension_numbers = #tpu.dot_dimension_numbers<[1], [0], [0], [1], [0, 0, 1, 1], [], []>} : vector<16x6xbf16>, vector<6x120xbf16>, vector<16x120xf32> -> vector<16x120xf32>
    %92 = arith.addf %52, %91 : vector<16x120xf32>
    %c1_29 = arith.constant 1 : index
    %c0_30 = arith.constant 0 : index
    %c0_31 = arith.constant 0 : index
    %93 = vector.load %arg5[%c1_29, %c0_30, %c0_31] : memref<3x6x120xbf16, #tpu.memory_space<vmem>>, vector<1x6x120xbf16>
    %94 = vector.shape_cast %93 : vector<1x6x120xbf16> to vector<6x120xbf16>
    %cst_32 = arith.constant dense<0.000000e+00> : vector<16x120xf32>
    %95 = tpu.matmul %79, %94, %cst_32 {dimension_numbers = #tpu.dot_dimension_numbers<[1], [0], [0], [1], [0, 0, 1, 1], [], []>} : vector<16x6xbf16>, vector<6x120xbf16>, vector<16x120xf32> -> vector<16x120xf32>
    %96 = arith.addf %92, %95 : vector<16x120xf32>
    %c1_33 = arith.constant 1 : index
    %c0_34 = arith.constant 0 : index
    %c0_35 = arith.constant 0 : index
    %97 = vector.load %arg6[%c1_33, %c0_34, %c0_35] : memref<3x6x120xbf16, #tpu.memory_space<vmem>>, vector<1x6x120xbf16>
    %98 = vector.shape_cast %97 : vector<1x6x120xbf16> to vector<6x120xbf16>
    %cst_36 = arith.constant dense<0.000000e+00> : vector<16x120xf32>
    %99 = tpu.matmul %88, %98, %cst_36 {dimension_numbers = #tpu.dot_dimension_numbers<[1], [0], [0], [1], [0, 0, 1, 1], [], []>} : vector<16x6xbf16>, vector<6x120xbf16>, vector<16x120xf32> -> vector<16x120xf32>
    %100 = arith.addf %96, %99 : vector<16x120xf32>
    %c0_37 = arith.constant 0 : index
    %c500 = arith.constant 500 : index
    %101 = vector.load %arg2[%c0_37, %c500] : memref<16x1050xf32, #tpu.memory_space<vmem>>, vector<16x550xf32>
    %102 = arith.truncf %101 : vector<16x550xf32> to vector<16x550xbf16>
    %cst_38 = arith.constant dense<0.000000e+00> : vector<16x27xf32>
    %103 = tpu.matmul %102, %0, %cst_38 {dimension_numbers = #tpu.dot_dimension_numbers<[1], [0], [0], [1], [0, 0, 1, 1], [], []>} : vector<16x550xbf16>, vector<550x27xbf16>, vector<16x27xf32> -> vector<16x27xf32>
    %104 = vector.extract_strided_slice %103 {offsets = [0, 0], sizes = [16, 9], strides = [1, 1]} : vector<16x27xf32> to vector<16x9xf32>
    %105 = vector.broadcast %1 : f32 to vector<16x9xf32>
    %106 = arith.addf %104, %105 : vector<16x9xf32>
    %cst_39 = arith.constant 0.000000e+00 : f32
    %107 = vector.broadcast %cst_39 : f32 to vector<16x9xf32>
    %108 = arith.maximumf %106, %107 : vector<16x9xf32>
    %109 = vector.extract_strided_slice %108 {offsets = [0, 0], sizes = [16, 6], strides = [1, 1]} : vector<16x9xf32> to vector<16x6xf32>
    %110 = vector.extract_strided_slice %108 {offsets = [0, 1], sizes = [16, 6], strides = [1, 1]} : vector<16x9xf32> to vector<16x6xf32>
    %111 = arith.maximumf %109, %110 : vector<16x6xf32>
    %112 = vector.extract_strided_slice %108 {offsets = [0, 2], sizes = [16, 6], strides = [1, 1]} : vector<16x9xf32> to vector<16x6xf32>
    %113 = arith.maximumf %111, %112 : vector<16x6xf32>
    %114 = vector.extract_strided_slice %108 {offsets = [0, 3], sizes = [16, 6], strides = [1, 1]} : vector<16x9xf32> to vector<16x6xf32>
    %115 = arith.maximumf %113, %114 : vector<16x6xf32>
    %116 = arith.truncf %115 : vector<16x6xf32> to vector<16x6xbf16>
    %117 = vector.extract_strided_slice %103 {offsets = [0, 9], sizes = [16, 9], strides = [1, 1]} : vector<16x27xf32> to vector<16x9xf32>
    %118 = vector.broadcast %2 : f32 to vector<16x9xf32>
    %119 = arith.addf %117, %118 : vector<16x9xf32>
    %cst_40 = arith.constant 0.000000e+00 : f32
    %120 = vector.broadcast %cst_40 : f32 to vector<16x9xf32>
    %121 = arith.maximumf %119, %120 : vector<16x9xf32>
    %122 = vector.extract_strided_slice %121 {offsets = [0, 0], sizes = [16, 6], strides = [1, 1]} : vector<16x9xf32> to vector<16x6xf32>
    %123 = vector.extract_strided_slice %121 {offsets = [0, 1], sizes = [16, 6], strides = [1, 1]} : vector<16x9xf32> to vector<16x6xf32>
    %124 = arith.maximumf %122, %123 : vector<16x6xf32>
    %125 = vector.extract_strided_slice %121 {offsets = [0, 2], sizes = [16, 6], strides = [1, 1]} : vector<16x9xf32> to vector<16x6xf32>
    %126 = arith.maximumf %124, %125 : vector<16x6xf32>
    %127 = arith.truncf %126 : vector<16x6xf32> to vector<16x6xbf16>
    %128 = vector.extract_strided_slice %103 {offsets = [0, 18], sizes = [16, 9], strides = [1, 1]} : vector<16x27xf32> to vector<16x9xf32>
    %129 = vector.broadcast %3 : f32 to vector<16x9xf32>
    %130 = arith.addf %128, %129 : vector<16x9xf32>
    %cst_41 = arith.constant 0.000000e+00 : f32
    %131 = vector.broadcast %cst_41 : f32 to vector<16x9xf32>
    %132 = arith.maximumf %130, %131 : vector<16x9xf32>
    %133 = vector.extract_strided_slice %132 {offsets = [0, 0], sizes = [16, 6], strides = [1, 1]} : vector<16x9xf32> to vector<16x6xf32>
    %134 = vector.extract_strided_slice %132 {offsets = [0, 1], sizes = [16, 6], strides = [1, 1]} : vector<16x9xf32> to vector<16x6xf32>
    %135 = arith.maximumf %133, %134 : vector<16x6xf32>
    %136 = arith.truncf %135 : vector<16x6xf32> to vector<16x6xbf16>
    %c2_42 = arith.constant 2 : index
    %c0_43 = arith.constant 0 : index
    %c0_44 = arith.constant 0 : index
    %137 = vector.load %arg4[%c2_42, %c0_43, %c0_44] : memref<3x6x120xbf16, #tpu.memory_space<vmem>>, vector<1x6x120xbf16>
    %138 = vector.shape_cast %137 : vector<1x6x120xbf16> to vector<6x120xbf16>
    %cst_45 = arith.constant dense<0.000000e+00> : vector<16x120xf32>
    %139 = tpu.matmul %116, %138, %cst_45 {dimension_numbers = #tpu.dot_dimension_numbers<[1], [0], [0], [1], [0, 0, 1, 1], [], []>} : vector<16x6xbf16>, vector<6x120xbf16>, vector<16x120xf32> -> vector<16x120xf32>
    %140 = arith.addf %100, %139 : vector<16x120xf32>
    %c2_46 = arith.constant 2 : index
    %c0_47 = arith.constant 0 : index
    %c0_48 = arith.constant 0 : index
    %141 = vector.load %arg5[%c2_46, %c0_47, %c0_48] : memref<3x6x120xbf16, #tpu.memory_space<vmem>>, vector<1x6x120xbf16>
    %142 = vector.shape_cast %141 : vector<1x6x120xbf16> to vector<6x120xbf16>
    %cst_49 = arith.constant dense<0.000000e+00> : vector<16x120xf32>
    %143 = tpu.matmul %127, %142, %cst_49 {dimension_numbers = #tpu.dot_dimension_numbers<[1], [0], [0], [1], [0, 0, 1, 1], [], []>} : vector<16x6xbf16>, vector<6x120xbf16>, vector<16x120xf32> -> vector<16x120xf32>
    %144 = arith.addf %140, %143 : vector<16x120xf32>
    %c2_50 = arith.constant 2 : index
    %c0_51 = arith.constant 0 : index
    %c0_52 = arith.constant 0 : index
    %145 = vector.load %arg6[%c2_50, %c0_51, %c0_52] : memref<3x6x120xbf16, #tpu.memory_space<vmem>>, vector<1x6x120xbf16>
    %146 = vector.shape_cast %145 : vector<1x6x120xbf16> to vector<6x120xbf16>
    %cst_53 = arith.constant dense<0.000000e+00> : vector<16x120xf32>
    %147 = tpu.matmul %136, %146, %cst_53 {dimension_numbers = #tpu.dot_dimension_numbers<[1], [0], [0], [1], [0, 0, 1, 1], [], []>} : vector<16x6xbf16>, vector<6x120xbf16>, vector<16x120xf32> -> vector<16x120xf32>
    %148 = arith.addf %144, %147 : vector<16x120xf32>
    %c0_54 = arith.constant 0 : index
    %c0_55 = arith.constant 0 : index
    %149 = vector.load %arg7[%c0_54, %c0_55] : memref<1x120xf32, #tpu.memory_space<vmem>>, vector<1x120xf32>
    %150 = vector.broadcast %149 : vector<1x120xf32> to vector<16x120xf32>
    %151 = arith.addf %148, %150 : vector<16x120xf32>
    %cst_56 = arith.constant 0.000000e+00 : f32
    %152 = vector.broadcast %cst_56 : f32 to vector<16x120xf32>
    %153 = arith.maximumf %151, %152 : vector<16x120xf32>
    %154 = arith.truncf %153 : vector<16x120xf32> to vector<16x120xbf16>
    %c0_57 = arith.constant 0 : index
    %c0_58 = arith.constant 0 : index
    %155 = vector.load %arg8[%c0_57, %c0_58] : memref<120x50xbf16, #tpu.memory_space<vmem>>, vector<120x50xbf16>
    %cst_59 = arith.constant dense<0.000000e+00> : vector<16x50xf32>
    %156 = tpu.matmul %154, %155, %cst_59 {dimension_numbers = #tpu.dot_dimension_numbers<[1], [0], [0], [1], [0, 0, 1, 1], [], []>} : vector<16x120xbf16>, vector<120x50xbf16>, vector<16x50xf32> -> vector<16x50xf32>
    %c0_60 = arith.constant 0 : index
    %c0_61 = arith.constant 0 : index
    %157 = vector.load %arg9[%c0_60, %c0_61] : memref<1x50xf32, #tpu.memory_space<vmem>>, vector<1x50xf32>
    %158 = vector.broadcast %157 : vector<1x50xf32> to vector<16x50xf32>
    %159 = arith.addf %156, %158 : vector<16x50xf32>
    %cst_62 = arith.constant 0.000000e+00 : f32
    %160 = vector.broadcast %cst_62 : f32 to vector<16x50xf32>
    %161 = arith.maximumf %159, %160 : vector<16x50xf32>
    %162 = arith.truncf %161 : vector<16x50xf32> to vector<16x50xbf16>
    %c0_63 = arith.constant 0 : index
    %c0_64 = arith.constant 0 : index
    %163 = vector.load %arg10[%c0_63, %c0_64] : memref<50x4xbf16, #tpu.memory_space<vmem>>, vector<50x4xbf16>
    %cst_65 = arith.constant dense<0.000000e+00> : vector<16x4xf32>
    %164 = tpu.matmul %162, %163, %cst_65 {dimension_numbers = #tpu.dot_dimension_numbers<[1], [0], [0], [1], [0, 0, 1, 1], [], []>} : vector<16x50xbf16>, vector<50x4xbf16>, vector<16x4xf32> -> vector<16x4xf32>
    %c0_66 = arith.constant 0 : index
    %c0_67 = arith.constant 0 : index
    %165 = vector.load %arg11[%c0_66, %c0_67] : memref<1x4xf32, #tpu.memory_space<vmem>>, vector<1x4xf32>
    %166 = vector.broadcast %165 : vector<1x4xf32> to vector<16x4xf32>
    %167 = arith.addf %164, %166 : vector<16x4xf32>
    %c0_68 = arith.constant 0 : index
    %c0_69 = arith.constant 0 : index
    %168 = vector.load %arg12[%c0_68, %c0_69] : memref<16x4xf32, #tpu.memory_space<vmem>>, vector<16x4xf32>
    tpu.vector_store %arg12[%c0_68, %c0_69], %167 {strides = array<i32>} : memref<16x4xf32, #tpu.memory_space<vmem>>, vector<16x4xf32>,
    return
  }
  func.func @transform_0(%arg0: i32) -> i32 {
    %c0_i32 = arith.constant 0 : i32
    %c0_i32_0 = arith.constant 0 : i32
    return %c0_i32 : i32
  }
  func.func @transform_1(%arg0: i32) -> (i32, i32) {
    %c0_i32 = arith.constant 0 : i32
    %c0_i32_0 = arith.constant 0 : i32
    return %arg0, %c0_i32 : i32, i32
  }
  func.func @transform_2(%arg0: i32) -> (i32, i32) {
    %c0_i32 = arith.constant 0 : i32
    %c0_i32_0 = arith.constant 0 : i32
    %c0_i32_1 = arith.constant 0 : i32
    return %c0_i32, %c0_i32_0 : i32, i32
  }
  func.func @transform_3(%arg0: i32) -> (i32, i32, i32) {
    %c0_i32 = arith.constant 0 : i32
    %c0_i32_0 = arith.constant 0 : i32
    %c0_i32_1 = arith.constant 0 : i32
    %c0_i32_2 = arith.constant 0 : i32
    return %c0_i32, %c0_i32_0, %c0_i32_1 : i32, i32, i32
  }
  func.func @transform_4(%arg0: i32) -> (i32, i32, i32) {
    %c0_i32 = arith.constant 0 : i32
    %c0_i32_0 = arith.constant 0 : i32
    %c0_i32_1 = arith.constant 0 : i32
    %c0_i32_2 = arith.constant 0 : i32
    return %c0_i32, %c0_i32_0, %c0_i32_1 : i32, i32, i32
  }
  func.func @transform_5(%arg0: i32) -> (i32, i32, i32) {
    %c0_i32 = arith.constant 0 : i32
    %c0_i32_0 = arith.constant 0 : i32
    %c0_i32_1 = arith.constant 0 : i32
    %c0_i32_2 = arith.constant 0 : i32
    return %c0_i32, %c0_i32_0, %c0_i32_1 : i32, i32, i32
  }
  func.func @transform_6(%arg0: i32) -> (i32, i32) {
    %c0_i32 = arith.constant 0 : i32
    %c0_i32_0 = arith.constant 0 : i32
    %c0_i32_1 = arith.constant 0 : i32
    return %c0_i32, %c0_i32_0 : i32, i32
  }
  func.func @transform_7(%arg0: i32) -> (i32, i32) {
    %c0_i32 = arith.constant 0 : i32
    %c0_i32_0 = arith.constant 0 : i32
    %c0_i32_1 = arith.constant 0 : i32
    return %c0_i32, %c0_i32_0 : i32, i32
  }
  func.func @transform_8(%arg0: i32) -> (i32, i32) {
    %c0_i32 = arith.constant 0 : i32
    %c0_i32_0 = arith.constant 0 : i32
    %c0_i32_1 = arith.constant 0 : i32
    return %c0_i32, %c0_i32_0 : i32, i32
  }
  func.func @transform_9(%arg0: i32) -> (i32, i32) {
    %c0_i32 = arith.constant 0 : i32
    %c0_i32_0 = arith.constant 0 : i32
    %c0_i32_1 = arith.constant 0 : i32
    return %c0_i32, %c0_i32_0 : i32, i32
  }
  func.func @transform_10(%arg0: i32) -> (i32, i32) {
    %c0_i32 = arith.constant 0 : i32
    %c0_i32_0 = arith.constant 0 : i32
    %c0_i32_1 = arith.constant 0 : i32
    return %c0_i32, %c0_i32_0 : i32, i32
  }
  func.func @transform_11(%arg0: i32) -> (i32, i32) {
    %c0_i32 = arith.constant 0 : i32
    %c0_i32_0 = arith.constant 0 : i32
    return %arg0, %c0_i32 : i32, i32
  }
}

</mosaic_0001>

<bundles_post_ra>
// kernel: tpu_custom_call.1
= control target key start
LH: loop header
LB: loop body
LE: loop exit
PB: predicated region body
PF: predicated region fallthrough
CT: control target
= control target key end

     0   :  { %16 = vsyncpa [#allocation3], 0  ;;  %s3139_s17 = smov 0   ;;  %s3141_s18 = smov 0   ;;  %s3783_s0 = inlined_call_operand.vmem [shape: f32[3], index: 0, kind: input, shape index: {}]   ;;  %s3784_s1 = inlined_call_operand.vmem [shape: f32[21,1050], index: 1, kind: input, shape index: {}]   ;;  %s3785_s2 = inlined_call_operand.vmem [shape: bf16[550,27], index: 2, kind: input, shape index: {}]   ;;  %s3786_s3 = inlined_call_operand.vmem [shape: bf16[3,6,120], index: 3, kind: input, shape index: {}]   ;;  %s3787_s4 = inlined_call_operand.vmem [shape: bf16[3,6,120], index: 4, kind: input, shape index: {}]   ;;  %s3788_s5 = inlined_call_operand.vmem [shape: bf16[3,6,120], index: 5, kind: input, shape index: {}]   ;;  %s3789_s6 = inlined_call_operand.vmem [shape: f32[1,120], index: 6, kind: input, shape index: {}]   ;;  %s3790_s7 = inlined_call_operand.vmem [shape: bf16[120,50], index: 7, kind: input, shape index: {}]   ;;  %s3791_s8 = inlined_call_operand.vmem [shape: f32[1,50], index: 8, kind: input, shape index: {}]   ;;  %s3792_s9 = inlined_call_operand.vmem [shape: bf16[50,4], index: 9, kind: input, shape index: {}]   ;;  %s3793_s10 = inlined_call_operand.vmem [shape: f32[1,4], index: 10, kind: input, shape index: {}]   ;;  %s3794_s11 = inlined_call_operand.vmem [shape: f32[21,4], index: 11, kind: output, shape index: {}]  }
   0x1   :  { %s3143_s19 = smov 0  }
   0x2 LB: > { %s3152_s20 = sadd.s32 4294967295, %s3035_s19   ;;  %s3154_s21 = sadd.s32 1, %s3035_s19   ;;  %s3035_s19 = sphi %s3143_s19, %s3831_s19   ;;  %s3031_s18 = sphi %s3141_s18, %s3830_s18   ;;  %s3027_s17 = sphi %s3139_s17, %s3829_s17  }
   0x3   : > { %s262_s22 = ssub.s32 %s3035_s19, %s3154_s21  ;;  %s265_s23 = sadd.s32 1, %s3031_s18 }
   0x4   : > { %p263_p0 = scmp.eq.s32.totalorder %s262_s22, 0  ;;  %p275_p1 = scmp.ne.s32.totalorder %s3031_s18, %s3027_s17 }
   0x5   : > { %p276_p2 = scmp.eq.s32.totalorder %s3152_s20, 1  ;;  %p2324_p3 = scmp.ge.s32.totalorder %s3035_s19, 1 }
   0x6   : > { %s3162_s24 = scalar_select %p263_p0, %s3031_s18, %s265_s23  }
   0x7   : > { %p3164_p4 = por %p276_p2, %p275_p1  ;;  %p289_p5 = scmp.lt.s32.totalorder %s3035_s19, 3 }
   0x8   : > { %p2725_p6 = scmp.eq.s32.totalorder %s3152_s20, 0  ;;  %s302_s29 = sshll.u32 %s3783_s0, 4  ;;  %s303_s29 = int_to_ptr.vmem [resolvable:$true] %s302_s29 }
   0x9   : > { %p3169_p7 = pnand %p2324_p3, %p289_p5  ;;  %s2962_s30 = scalar_lea.vmem %s303_s29, 16 }
   0xa   : > { %p2963_p10 = scmp.ne.s32.totalorder %s303_s29, %s2962_s30  ;;  %p2970_p0 = scmp.lt.s32.totalorder %s303_s29, %s303_s29 }
   0xb   : > { %p2721_p8 = pneg %p3169_p7  ;;  %p2971_p1 = scmp.lt.s32.totalorder %s2962_s30, %s2962_s30 }
   0xd   : > { %p2722_p9 = pnand %p2725_p6, %p2721_p8  ;;  %p2972_p2 = por %p2971_p1, %p2970_p0 }
   0xf   : > { %p2964_p11 = pneg %p2722_p9 }
  0x11   : > { %p2965_p12 = pnand %p2964_p11, %p2963_p10 }
  0x13   : > { %p2966_p13 = pneg %p2965_p12 }
  0x15   : > { %p2973_p3 = pnand %p2972_p2, %p2966_p13 }
  0x17   : > { %2976 = shalt.err (!%p2973_p3)
}
  0x18   : > { %s3069_s12 = smov [#allocation2]   ;;  %362 = sbr.rel (%p3169_p7) target bundleno = 2261 (0x8d5), region = 64 }
  0x19   : > { %2724 = dma.vmem_to_smem (!%p2722_p9), %s303_s29, 16, %s3069_s12, [#allocation3]  }
  0x1f   : > { %3022 = dma.done.wait (%p2725_p6), [#allocation3], 16  }
  0x20   : > { %3024 = vsyncadd (%p2725_p6), [#allocation3], 4294967280 }
  0x21   : > { %368 = sfence }
  0x22   : > { %v3189_v0 = vld [vmem:[%s3785_s2 + $0x40] sm:$0xff]   ;;  %v3212_v4 = vld [vmem:[%s3785_s2 + $0x48] sm:$0xff]   ;;  %v3236_v8 = vld [vmem:[%s3785_s2 + $0x50] sm:$0xff]   ;;  %s3275_s19 = sshll.u32 %s3152_s20, 1  ;;  %v3796_v39 = vmov 0.0   ;;  %vm729_vm0 = vcmask 1042432  }
  0x23   : > { %3810 = vst [vmem:[#allocation6_spill] sm:$0xff] %v3189_v0  ;;  %v3194_v1 = vld [vmem:[%s3785_s2 + $0xc0] sm:$0xff]   ;;  %2424 = vmatprep.subr.bf16.mxu0 %v3189_v0  ;;  %v3218_v5 = vld [vmem:[%s3785_s2 + $0xc8] sm:$0xff]   ;;  %v3242_v9 = vld [vmem:[%s3785_s2 + $0xd0] sm:$0xff]   ;;  %p414_p5 = scmp.lt.s32.totalorder %s3275_s19, 2  ;;  %vm3071_vm1 = vmmov 0  }
  0x24   : > { %v3200_v2 = vld [vmem:[%s3785_s2] sm:$0xff]   ;;  %2446 = vmatprep.subr.bf16.mxu1 %v3194_v1  ;;  %v3224_v6 = vld [vmem:[%s3785_s2 + $0x8] sm:$0xff]   ;;  %v3248_v10 = vld [vmem:[%s3785_s2 + $0x10] sm:$0xff]   ;;  %vm725_vm2 = vcmask 310272   ;;  %s2332_s14 = sld [smem:[#allocation2 + $0x1]]  ;;  %s2333_s22 = sld [smem:[#allocation2 + $0x2]] }
  0x25   : > { %v3206_v3 = vld [vmem:[%s3785_s2 + $0x80] sm:$0xff]   ;;  %2425 = vmatpush3.bf16.msra.mxu0 %v3200_v2  ;;  %v3230_v7 = vld [vmem:[%s3785_s2 + $0x88] sm:$0xff]   ;;  %v3254_v11 = vld [vmem:[%s3785_s2 + $0x90] sm:$0xff]   ;;  %s415_s26 = scalar_select %p414_p5, %s3275_s19, 2  ;;  %vm933_vm3 = vcmask 48128   ;;  %vm1111_vm4 = vcmask 687104  }
  0x26   : > { %2447 = vmatpush3.bf16.msra.mxu1 %v3206_v3  ;;  %2426 = vmatprep.subr.bf16.mxu0 %v3212_v4  ;;  %v3260_v12 = vld [vmem:[%s3785_s2 + $0x58] sm:$0xff]   ;;  %v3287_v16 = vld [vmem:[%s3785_s2 + $0x60] sm:$0xff]   ;;  %v3312_v20 = vld [vmem:[%s3785_s2 + $0x68] sm:$0xff]   ;;  %s500_s23 = sld [smem:[#allocation2]]  ;;  %s3073_s29 = smov 126   ;;  %vm1510_vm5 = vcmask 97280  }
  0x27   : > { %2448 = vmatprep.subr.bf16.mxu1 %v3218_v5  ;;  %v3266_v13 = vld [vmem:[%s3785_s2 + $0xd8] sm:$0xff]   ;;  %v3293_v17 = vld [vmem:[%s3785_s2 + $0xe0] sm:$0xff]   ;;  %v3318_v21 = vld [vmem:[%s3785_s2 + $0xe8] sm:$0xff]   ;;  %s2716_s16 = smul.u32 72, %s415_s26  ;;  %s3074_s30 = smov 125   ;;  %vm1957_vm6 = vcmask 1043456  }
  0x28   : > { %v3272_v14 = vld [vmem:[%s3785_s2 + $0x18] sm:$0xff]   ;;  %v3300_v18 = vld [vmem:[%s3785_s2 + $0x20] sm:$0xff]   ;;  %v3325_v22 = vld [vmem:[%s3785_s2 + $0x28] sm:$0xff]   ;;  %s3075_s13 = smov 110   ;;  %s3078_s28 = smov 12   ;;  %vm1953_vm7 = vcmask 982016  }
  0x29   : > { %2427 = vmatpush3.bf16.msra.mxu0 %v3224_v6  ;;  %v3281_v15 = vld [vmem:[%s3785_s2 + $0x98] sm:$0xff]   ;;  %v3306_v19 = vld [vmem:[%s3785_s2 + $0xa0] sm:$0xff]   ;;  %v3331_v23 = vld [vmem:[%s3785_s2 + $0xa8] sm:$0xff]   ;;  %s3372_s15 = scalar_lea.vmem %s3784_s1, %s2716_s16  ;;  %s3072_s16 = smov 127   ;;  %vm2044_vm8 = vcmask 1040384   ;;  %vm2040_vm9 = vcmask 408576  }
  0x2a   : > { %2449 = vmatpush3.bf16.msra.mxu1 %v3230_v7  ;;  %2428 = vmatprep.subr.bf16.mxu0 %v3236_v8  ;;  %v3337_v24 = vld [vmem:[%s3785_s2 + $0x70] sm:$0xff]   ;;  %v3361_v28 = vld [vmem:[%s3785_s2 + $0x78] sm:$0xff]   ;;  %v504_v32 = vld [vmem:[%s3372_s15 + $0x8] sm:$0xff]  ;;  %s405_s27 = sand.u32 1, %s3027_s17   ;;  %vm2089_vm10 = vcmask 31744   ;;  %s2100_s17 = ssub.s32 (%p3164_p4), 3, %s3275_s19 }
  0x2b   : > { %2450 = vmatprep.subr.bf16.mxu1 %v3242_v9  ;;  %v3343_v25 = vld [vmem:[%s3785_s2 + $0xf0] sm:$0xff]   ;;  %v3367_v29 = vld [vmem:[%s3785_s2 + $0xf8] sm:$0xff]   ;;  %v511_v36 = vld [vmem:[%s3372_s15 + $0x60] sm:$0xff]  ;;  %p2101_p6 = scmp.lt.s32.totalorder (%p3164_p4), %s2100_s17, 2 }
  0x2c   : > { %v3349_v26 = vld [vmem:[%s3785_s2 + $0x30] sm:$0xff]   ;;  %v3378_v30 = vld [vmem:[%s3785_s2 + $0x38] sm:$0xff]   ;;  %v503_v37 = vld [vmem:[%s3372_s15] sm:$0xff] }
  0x2d   : > { %2429 = vmatpush3.bf16.msra.mxu0 %v3248_v10  ;;  %v3355_v27 = vld [vmem:[%s3785_s2 + $0xb0] sm:$0xff]   ;;  %v3384_v31 = vld [vmem:[%s3785_s2 + $0xb8] sm:$0xff]   ;;  %v508_v38 = vld [vmem:[%s3372_s15 + $0x48] sm:$0xff] }
  0x2e   : > { %2451 = vmatpush3.bf16.msra.mxu1 %v3254_v11  ;;  %2430 = vmatprep.subr.bf16.mxu0 %v3260_v12  ;;  %v509_v33 = vld [vmem:[%s3372_s15 + $0x50] sm:$0xff]  ;;  %v506_v34 = vld [vmem:[%s3372_s15 + $0x18] sm:$0xff]  ;;  %v513_v41 = vpack.c.bf16 %v508_v38, %v503_v37  ;;  %v3405_v45 = vld [vmem:[%s3785_s2 + $0x100] sm:$0xff]   ;;  %v3440_v38 = vstv %s2333_s22  ;;  %s3077_s22 = smov 84  }
  0x2f   : > { %2452 = vmatprep.subr.bf16.mxu1 %v3266_v13  ;;  %v514_v35 = vpack.c.bf16 %v509_v33, %v504_v32  ;;  %v3395_v40 = vpack.c.bf16 %v511_v36, %v506_v34  ;;  %v505_v42 = vld [vmem:[%s3372_s15 + $0x10] sm:$0xff]  ;;  %v510_v43 = vld [vmem:[%s3372_s15 + $0x58] sm:$0xff]  ;;  %v3413_v46 = vld [vmem:[%s3785_s2 + $0x108] sm:$0xff]   ;;  %3814 = vst [vmem:[#allocation10_spill] sm:$0xff] %v3440_v38 }
  0x30   : > { %v3400_v44 = vpack.c.bf16 %v510_v43, %v505_v42  ;;  %3811 = vst [vmem:[#allocation7_spill] sm:$0xff] %v3413_v46  ;;  %v2949_v47 = vld [vmem:[%s3785_s2 + $0x110] ss:$0 sps:$4 sm:$0x77]   ;;  %v507_v49 = vld [vmem:[%s3372_s15 + $0x20] sm:$0xff]  ;;  %v512_v50 = vld [vmem:[%s3372_s15 + $0x68] sm:$0xff] }
  0x31   : > { %2431 = vmatpush3.bf16.msra.mxu0 %v3272_v14  ;;  %765 = vmatprep.mubr.bf16.mxu0 %v514_v35  ;;  %v3422_v48 = vsel %vm729_vm0, %v2949_v47, 0  ;;  %v3430_v51 = vpack.c.bf16 %v512_v50, %v507_v49  ;;  %v3438_v35 = vstv %s2332_s14  ;;  %v3444_v50 = vstv %s500_s23  ;;  %s3076_s14 = smov 119  }
  0x32   : > { %2453 = vmatpush3.bf16.msra.mxu1 %v3281_v15  ;;  %2432 = vmatprep.subr.bf16.mxu0 %v3287_v16  ;;  %3812 = vst [vmem:[#allocation8_spill] sm:$0xff] %v3422_v48  ;;  %3813 = vst [vmem:[#allocation9_spill] sm:$0xff] %v3438_v35 }
  0x33   : > { %2454 = vmatprep.subr.bf16.mxu1 %v3293_v17  ;;  %806 = vmatprep.mubr.bf16.mxu1 %v3395_v40  ;;  %3815 = vst [vmem:[#allocation11_spill] sm:$0xff] %v3444_v50 }
  0x35   : > { %2433 = vmatpush3.bf16.msra.mxu0 %v3300_v18 }
  0x36   : > { %2455 = vmatpush3.bf16.msra.mxu1 %v3306_v19  ;;  %2434 = vmatprep.subr.bf16.mxu0 %v3312_v20 }
  0x37   : > { %2456 = vmatprep.subr.bf16.mxu1 %v3318_v21 }
  0x39   : > { %2435 = vmatpush3.bf16.msra.mxu0 %v3325_v22 }
  0x3a   : > { %2457 = vmatpush3.bf16.msra.mxu1 %v3331_v23  ;;  %2436 = vmatprep.subr.bf16.mxu0 %v3337_v24 }
  0x3b   : > { %2458 = vmatprep.subr.bf16.mxu1 %v3343_v25 }
  0x3d   : > { %2437 = vmatpush3.bf16.msra.mxu0 %v3349_v26 }
  0x3e   : > { %2459 = vmatpush3.bf16.msra.mxu1 %v3355_v27  ;;  %2438 = vmatprep.subr.bf16.mxu0 %v3361_v28 }
  0x3f   : > { %2460 = vmatprep.subr.bf16.mxu1 %v3367_v29 }
  0x41   : > { %2439 = vmatpush3.bf16.msra.mxu0 %v3378_v30 }
  0x42   : > { %2461 = vmatpush3.bf16.msra.mxu1 %v3384_v31  ;;  %2600 = vmatprep.subr.bf16.mxu0 %v3796_v39 }
  0x43   : > { %2616 = vmatprep.subr.bf16.mxu1 %v3796_v39 }
  0x44   : > { %766 = vmatmul.mubr.bf16.vlgmr.msra.gmra.mrb[0].mxu0 %v513_v41 }
  0x45   : > { %807 = vmatmul.mubr.bf16.vlgmr.msra.gmra.mrb[0].mxu1 %v3400_v44  ;;  %2601 = vmatpush3.bf16.msra.mxu0 %v3405_v45 }
  0x46   : > { %2602 = vmatprep.subr.bf16.mxu0 %v3796_v39  ;;  %2606 = vmatprep.mubr.msk.bf16.mxu0 %vm3071_vm1, %v3796_v39 }
  0x47   : > { %2618 = vmatprep.mubr.msk.bf16.mxu1 %vm3071_vm1, %v3796_v39 }
  0x49   : > { %2603 = vmatpush3.bf16.msra.mxu0 %v3413_v46 }
  0x4a   : > { %2604 = vmatprep.subr.bf16.mxu0 %v3796_v39 }
  0x4d   : > { %2605 = vmatpush3.bf16.msra.mxu0 %v3422_v48 }
  0x4e   : > { %2610 = vmatprep.subr.bf16.mxu0 %v3796_v39 }
  0x50   : > { %2607 = vmatmul.mubr.msk.bf16.vlgmr.msra.gmra.mrb[4].mxu0 %vm725_vm2, %v3430_v51 }
  0x51   : > { %2612 = vmatprep.mubr.msk.bf16.mxu0 %vm3071_vm1, %v3796_v39 }
 0x117   : > { %v2440_v52 = vpop.f32.mrb[0].mxu0 }
 0x118   : > { %v2462_v53 = vpop.f32.mrb[0].mxu1  ;;  %v2441_v54 = vpop.f32.mrb[1].mxu0 }
 0x119   : > { %v2442_v55 = vadd.f32 %v2441_v54, %v2440_v52  ;;  %v2463_v56 = vpop.f32.mrb[1].mxu1  ;;  %v2443_v57 = vpop.f32.mrb[2].mxu0 }
 0x11a   : > { %v2464_v58 = vadd.f32 %v2463_v56, %v2462_v53  ;;  %v2465_v59 = vpop.f32.mrb[2].mxu1  ;;  %v2444_v60 = vpop.f32.mrb[3].mxu0 }
 0x11b   : > { %v2445_v61 = vadd.f32 %v2444_v60, %v2443_v57  ;;  %v2466_v62 = vpop.f32.mrb[3].mxu1 }
 0x11c   : > { %v2467_v63 = vadd.f32 %v2466_v62, %v2465_v59  ;;  %v809_v32 = vadd.f32 %v2464_v58, %v2442_v55 }
 0x11e   : > { %v812_v33 = vadd.f32 %v2467_v63, %v2445_v61  ;;  %v928_v63 = vld [vmem:[%s3786_s3] sm:$0x7] }
 0x123   : > { %v849_v34 = vpop.f32.mrb[4].mxu0 }
 0x124   : > { %v850_v36 = vadd.f32 %v849_v34, %v809_v32  ;;  %v2608_v37 = vpop.f32.mrb[5].mxu0  ;;  %v985_v32 = vsel %vm729_vm0, %v928_v63, 0 }
 0x125   : > { %v852_v41 = vpop.f32.mrb[6].mxu0  ;;  %2617 = vmatpush3.bf16.msra.mxu1 %v985_v32 }
 0x126   : > { %v889_v42 = vadd.f32 %v3438_v35, %v850_v36  ;;  %v853_v43 = vadd.f32 %v852_v41, %v812_v33  ;;  %v2609_v47 = vpop.f32.mrb[7].mxu0  ;;  %v913_v49 = vadd.f32 %v3440_v38, %v850_v36  ;;  %v857_v57 = vadd.f32 %v3444_v50, %v850_v36  ;;  %2478 = vmatprep.subr.bf16.mxu1 %v3189_v0  ;;  %v929_v36 = vld [vmem:[%s3787_s4] sm:$0x7] }
 0x127   : > { %v938_v37 = vsel %vm729_vm0, %v929_v36, 0 }
 0x128   : > { %v890_v52 = vadd.f32 %v3438_v35, %v853_v43  ;;  %v858_v53 = vadd.f32 %v3444_v50, %v853_v43  ;;  %v914_v54 = vadd.f32 %v3440_v38, %v853_v43  ;;  %v891_v55 = vmax.f32 %v889_v42, 0.0  ;;  %2611 = vmatpush3.bf16.msra.mxu0 %v938_v37 }
 0x129   : > { %v915_v58 = vmax.f32 %v913_v49, 0.0  ;;  %v859_v33 = vmax.f32 %v857_v57, 0.0  ;;  %2622 = vmatprep.subr.bf16.mxu0 %v3796_v39 }
 0x12a   : > { %v892_v56 = vmax.f32 %v890_v52, 0.0  ;;  %v916_v59 = vmax.f32 %v914_v54, 0.0  ;;  %v860_v61 = vmax.f32 %v858_v53, 0.0 }
 0x12c   : > { %v2825_v60 = vpack.i.bf16 %v892_v56, %v891_v55  ;;  %v2835_v62 = vpack.i.bf16 %v916_v59, %v915_v58  ;;  %v2840_v34 = vpack.i.bf16 %v860_v61, %v859_v33 }
 0x12e   : > { %2826 = vrot.lane.b32.xlu0 %v2825_v60, %s3072_s16  ;;  %2836 = vrot.lane.b32.xlu1 %v2835_v62, %s3072_s16 }
 0x132   : > { %2831 = vrot.lane.b32.xlu0 %v2825_v60, %s3073_s29  ;;  %2841 = vrot.lane.b32.xlu1 %v2840_v34, %s3072_s16 }
 0x136   : > { %2846 = vrot.lane.b32.xlu0 %v2840_v34, %s3073_s29  ;;  %2851 = vrot.lane.b32.xlu1 %v2840_v34, %s3074_s30 }
 0x1a0   : > { %v2827_v41 = vpop.permute.xlu0 %2826  ;;  %v2837_v42 = vpop.permute.xlu1 %2836 }
 0x1a1   : > { %v2829_v43 = vunpack.i.h.bf16 %v2827_v41  ;;  %v2828_v47 = vunpack.i.l.bf16 %v2827_v41  ;;  %v2839_v49 = vunpack.i.h.bf16 %v2837_v42  ;;  %v2838_v52 = vunpack.i.l.bf16 %v2837_v42 }
 0x1a3   : > { %v926_v53 = vmax.f32 %v916_v59, %v2839_v49  ;;  %v925_v54 = vmax.f32 %v915_v58, %v2838_v52  ;;  %v902_v60 = vmax.f32 %v892_v56, %v2829_v43  ;;  %v901_v62 = vmax.f32 %v891_v55, %v2828_v47  ;;  %v1084_v43 = vld [vmem:[%s3372_s15 + $0x28] sm:$0xff]  ;;  %v1089_v47 = vld [vmem:[%s3372_s15 + $0x70] sm:$0xff] }
 0x1a4   : > { %v2832_v57 = vpop.permute.xlu0 %2831  ;;  %v2842_v34 = vpop.permute.xlu1 %2841 }
 0x1a5   : > { %v2834_v63 = vunpack.i.h.bf16 %v2832_v57  ;;  %v2833_v32 = vunpack.i.l.bf16 %v2832_v57  ;;  %v2844_v36 = vunpack.i.h.bf16 %v2842_v34  ;;  %v2843_v37 = vunpack.i.l.bf16 %v2842_v34 }
 0x1a6   : > { %v927_v0 = vpack.c.bf16 %v926_v53, %v925_v54 }
 0x1a7   : > { %v909_v39 = vmax.f32 %v901_v62, %v2833_v32  ;;  %v910_v38 = vmax.f32 %v902_v60, %v2834_v63  ;;  %v870_v50 = vmax.f32 %v860_v61, %v2844_v36  ;;  %v869_v59 = vmax.f32 %v859_v33, %v2843_v37  ;;  %v1028_v60 = vld [vmem:[%s3788_s5] sm:$0x7] }
 0x1a8   : > { %1030 = vrot.lane.b32.xlu1 %v927_v0, %s3075_s13  ;;  %v2847_v41 = vpop.permute.xlu0 %2846  ;;  %v2852_v56 = vpop.permute.xlu1 %2851  ;;  %v3471_v0 = vpack.c.bf16 %v1089_v47, %v1084_v43  ;;  %v1036_v63 = vsel %vm729_vm0, %v1028_v60, 0 }
 0x1a9   : > { %v2849_v58 = vunpack.i.h.bf16 %v2847_v41  ;;  %v2848_v42 = vunpack.i.l.bf16 %v2847_v41  ;;  %v911_v55 = vpack.c.bf16 %v910_v38, %v909_v39  ;;  %v2854_v57 = vunpack.i.h.bf16 %v2852_v56  ;;  %v1085_v38 = vld [vmem:[%s3372_s15 + $0x30] sm:$0xff] }
 0x1aa   : > { %v2853_v53 = vunpack.i.l.bf16 %v2852_v56 }
 0x1ab   : > { %v877_v49 = vmax.f32 %v869_v59, %v2848_v42  ;;  %v878_v52 = vmax.f32 %v870_v50, %v2849_v58  ;;  %931 = vrot.lane.b32.xlu0 %v911_v55, %s3076_s14  ;;  %v1090_v50 = vld [vmem:[%s3372_s15 + $0x78] sm:$0xff] }
 0x1ac   : > { %1105 = vrot.lane.b32.xlu1 %v3430_v51, %s3077_s22  ;;  %v3480_v54 = vpack.c.bf16 %v1090_v50, %v1085_v38 }
 0x1ad   : > { %v885_v61 = vmax.f32 %v877_v49, %v2853_v53  ;;  %v886_v33 = vmax.f32 %v878_v52, %v2854_v57 }
 0x1af   : > { %v887_v39 = vpack.c.bf16 %v886_v33, %v885_v61  ;;  %1103 = vrot.lane.b32.xlu0 %v3395_v40, %s3077_s22 }
 0x1b0   : > { %1107 = vrot.lane.b32.xlu1 %v3471_v0, %s3077_s22 }
 0x1b1   : > { %2619 = vmatmul.mubr.msk.bf16.vlgmr.msra.gmra.mrb[4].mxu1 %vm933_vm3, %v887_v39 }
 0x1b2   : > { %2479 = vmatpush3.bf16.msra.mxu1 %v3200_v2 }
 0x1b3   : > { %1101 = vrot.lane.b32.xlu0 %v3400_v44, %s3077_s22  ;;  %2480 = vmatprep.subr.bf16.mxu1 %v3212_v4  ;;  %v3816_v44 = vmov 0.0  }
 0x1b6   : > { %2481 = vmatpush3.bf16.msra.mxu1 %v3224_v6 }
 0x1b7   : > { %1109 = vrot.lane.b32.xlu0 %v3480_v54, %s3077_s22  ;;  %2482 = vmatprep.subr.bf16.mxu1 %v3236_v8  ;;  %s2421_s22 = sshll.u32 (%p3164_p4), %s3152_s20, 4 }
 0x1ba   : > { %2483 = vmatpush3.bf16.msra.mxu1 %v3248_v10 }
 0x1bb   : > { %2484 = vmatprep.subr.bf16.mxu1 %v3260_v12 }
 0x1be   : > { %2485 = vmatpush3.bf16.msra.mxu1 %v3272_v14 }
 0x1bf   : > { %2486 = vmatprep.subr.bf16.mxu1 %v3287_v16 }
 0x1c2   : > { %2487 = vmatpush3.bf16.msra.mxu1 %v3300_v18 }
 0x1c3   : > { %2488 = vmatprep.subr.bf16.mxu1 %v3312_v20 }
 0x1c6   : > { %2489 = vmatpush3.bf16.msra.mxu1 %v3325_v22 }
 0x1c7   : > { %2490 = vmatprep.subr.bf16.mxu1 %v3337_v24 }
 0x1ca   : > { %2491 = vmatpush3.bf16.msra.mxu1 %v3349_v26 }
 0x1cb   : > { %2492 = vmatprep.subr.bf16.mxu1 %v3361_v28 }
 0x1ce   : > { %2493 = vmatpush3.bf16.msra.mxu1 %v3378_v30 }
 0x1cf   : > { %2628 = vmatprep.subr.bf16.mxu1 %v3816_v44 }
 0x21a   : > { %v1031_v62 = vpop.permute.xlu1 %1030 }
 0x21d   : > { %v932_v32 = vpop.permute.xlu0 %931 }
 0x21e   : > { %2613 = vmatmul.mubr.msk.bf16.vlgmr.msra.gmra.mrb[8].mxu0 %vm933_vm3, %v932_v32  ;;  %v1106_v34 = vpop.permute.xlu1 %1105 }
 0x21f   : > { %2623 = vmatpush3.bf16.msra.mxu0 %v1036_v63  ;;  %2624 = vmatprep.mubr.msk.bf16.mxu0 %vm3071_vm1, %v3816_v44 }
 0x220   : > { %2500 = vmatprep.subr.bf16.mxu0 %v3194_v1 }
 0x221   : > { %v1104_v36 = vpop.permute.xlu0 %1103 }
 0x222   : > { %v1113_v37 = vsel %vm1111_vm4, %v1104_v36, %v1106_v34  ;;  %v1108_v58 = vpop.permute.xlu1 %1107 }
 0x223   : > { %1155 = vmatprep.mubr.bf16.mxu1 %v1113_v37  ;;  %v1114_v55 = vsel %vm1111_vm4, %v1106_v34, %v1108_v58 }
 0x225   : > { %v1102_v41 = vpop.permute.xlu0 %1101 }
 0x226   : > { %2625 = vmatmul.mubr.msk.bf16.vlgmr.msra.gmra.mrb[12].mxu0 %vm933_vm3, %v1031_v62  ;;  %v1112_v59 = vsel %vm1111_vm4, %v1102_v41, %v1104_v36 }
 0x227   : > { %2501 = vmatpush3.bf16.msra.mxu0 %v3206_v3  ;;  %1156 = vmatmul.mubr.bf16.vlgmr.msra.gmra.mrb[8].mxu1 %v1112_v59 }
 0x228   : > { %2502 = vmatprep.subr.bf16.mxu0 %v3218_v5  ;;  %2629 = vmatpush3.bf16.msra.mxu1 %v3405_v45 }
 0x229   : > { %2630 = vmatprep.subr.bf16.mxu1 %v3816_v44  ;;  %v1110_v42 = vpop.permute.xlu0 %1109  ;;  %2634 = vmatprep.mubr.msk.bf16.mxu1 %vm3071_vm1, %v3816_v44 }
 0x22a   : > { %v1115_v56 = vsel %vm1111_vm4, %v1108_v58, %v1110_v42 }
 0x22b   : > { %2503 = vmatpush3.bf16.msra.mxu0 %v3230_v7  ;;  %1196 = vmatprep.mubr.bf16.mxu0 %v1115_v56 }
 0x22c   : > { %2504 = vmatprep.subr.bf16.mxu0 %v3242_v9  ;;  %2631 = vmatpush3.bf16.msra.mxu1 %v3413_v46 }
 0x22d   : > { %2632 = vmatprep.subr.bf16.mxu1 %v3816_v44 }
 0x22f   : > { %2505 = vmatpush3.bf16.msra.mxu0 %v3254_v11 }
 0x230   : > { %2506 = vmatprep.subr.bf16.mxu0 %v3266_v13  ;;  %2633 = vmatpush3.bf16.msra.mxu1 %v3422_v48 }
 0x231   : > { %2650 = vmatprep.subr.bf16.mxu1 %v3816_v44 }
 0x233   : > { %2507 = vmatpush3.bf16.msra.mxu0 %v3281_v15  ;;  %2635 = vmatmul.mubr.msk.bf16.vlgmr.msra.gmra.mrb[12].mxu1 %vm725_vm2, %v1110_v42 }
 0x234   : > { %2508 = vmatprep.subr.bf16.mxu0 %v3293_v17  ;;  %2652 = vmatprep.mubr.msk.bf16.mxu1 %vm3071_vm1, %v3816_v44 }
 0x237   : > { %2509 = vmatpush3.bf16.msra.mxu0 %v3306_v19 }
 0x238   : > { %2510 = vmatprep.subr.bf16.mxu0 %v3318_v21 }
 0x23b   : > { %2511 = vmatpush3.bf16.msra.mxu0 %v3331_v23 }
 0x23c   : > { %2512 = vmatprep.subr.bf16.mxu0 %v3343_v25 }
 0x23f   : > { %2513 = vmatpush3.bf16.msra.mxu0 %v3355_v27 }
 0x240   : > { %2514 = vmatprep.subr.bf16.mxu0 %v3367_v29 }
 0x243   : > { %2515 = vmatpush3.bf16.msra.mxu0 %v3384_v31 }
 0x244   : > { %2638 = vmatprep.subr.bf16.mxu0 %v3816_v44 }
 0x246   : > { %1197 = vmatmul.mubr.bf16.vlgmr.msra.gmra.mrb[16].mxu0 %v1114_v55 }
 0x247   : > { %2640 = vmatprep.mubr.msk.bf16.mxu0 %vm3071_vm1, %v3816_v44 }
 0x284   : > { %v1021_v43 = vpop.f32.mrb[4].mxu1 }
 0x285   : > { %v2620_v47 = vpop.f32.mrb[5].mxu1 }
 0x286   : > { %v1024_v49 = vpop.f32.mrb[6].mxu1 }
 0x287   : > { %v2621_v52 = vpop.f32.mrb[7].mxu1 }
 0x2f1   : > { %v974_v57 = vpop.f32.mrb[8].mxu0 }
 0x2f2   : > { %v1022_v53 = vadd.f32 %v1021_v43, %v974_v57  ;;  %v2614_v61 = vpop.f32.mrb[9].mxu0 }
 0x2f3   : > { %v977_v33 = vpop.f32.mrb[10].mxu0 }
 0x2f4   : > { %v1025_v39 = vadd.f32 %v1024_v49, %v977_v33  ;;  %v2615_v38 = vpop.f32.mrb[11].mxu0 }
 0x2f9   : > { %v1072_v50 = vpop.f32.mrb[12].mxu0 }
 0x2fa   : > { %v3540_v60 = vadd.f32 %v1072_v50, %v1022_v53  ;;  %v2626_v62 = vpop.f32.mrb[13].mxu0  ;;  %v2494_v63 = vpop.f32.mrb[8].mxu1 }
 0x2fb   : > { %v1075_v32 = vpop.f32.mrb[14].mxu0  ;;  %v2495_v34 = vpop.f32.mrb[9].mxu1 }
 0x2fc   : > { %3817 = vst [vmem:[#allocation12_spill] sm:$0xff] %v3540_v60  ;;  %v3542_v36 = vadd.f32 %v1075_v32, %v1025_v39  ;;  %v2627_v37 = vpop.f32.mrb[15].mxu0  ;;  %v2496_v41 = vadd.f32 %v2495_v34, %v2494_v63  ;;  %v2497_v59 = vpop.f32.mrb[10].mxu1  ;;  %v3819_v63 = vld [vmem:[#allocation11_spill] sm:$0xff] }
 0x2fd   : > { %v2498_v58 = vpop.f32.mrb[11].mxu1 }
 0x2fe   : > { %3818 = vst [vmem:[#allocation13_spill] sm:$0xff] %v3542_v36  ;;  %v2499_v42 = vadd.f32 %v2498_v58, %v2497_v59  ;;  %v3820_v59 = vld [vmem:[#allocation10_spill] sm:$0xff] }
 0x306   : > { %v1239_v56 = vpop.f32.mrb[12].mxu1 }
 0x307   : > { %v2636_v55 = vpop.f32.mrb[13].mxu1 }
 0x308   : > { %v1242_v43 = vpop.f32.mrb[14].mxu1 }
 0x309   : > { %v2637_v47 = vpop.f32.mrb[15].mxu1 }
 0x319   : > { %v2516_v49 = vpop.f32.mrb[16].mxu0 }
 0x31a   : > { %v2517_v52 = vpop.f32.mrb[17].mxu0 }
 0x31b   : > { %v2518_v57 = vadd.f32 %v2517_v52, %v2516_v49  ;;  %v2519_v53 = vpop.f32.mrb[18].mxu0 }
 0x31c   : > { %v2520_v61 = vpop.f32.mrb[19].mxu0 }
 0x31d   : > { %v1199_v33 = vadd.f32 %v2518_v57, %v2496_v41  ;;  %v2521_v38 = vadd.f32 %v2520_v61, %v2519_v53 }
 0x31f   : > { %v1240_v50 = vadd.f32 %v1239_v56, %v1199_v33  ;;  %v1202_v62 = vadd.f32 %v2521_v38, %v2499_v42  ;;  %v2374_v42 = vld [vmem:[%s3786_s3 + $0x4] sm:$0x7] }
 0x320   : > { %v1321_v53 = vsel %vm729_vm0, %v2374_v42, 0  ;;  %v2378_v38 = vld [vmem:[%s3788_s5 + $0x4] sm:$0x7] }
 0x321   : > { %v1243_v39 = vadd.f32 %v1242_v43, %v1202_v62  ;;  %v1277_v32 = vadd.f32 %v1240_v50, %v3438_v35  ;;  %v1246_v55 = vadd.f32 %v1240_v50, %v3819_v63  ;;  %v1300_v49 = vadd.f32 %v1240_v50, %v3820_v59  ;;  %2639 = vmatpush3.bf16.msra.mxu0 %v1321_v53 }
 0x322   : > { %2644 = vmatprep.subr.bf16.mxu0 %v3816_v44  ;;  %v1429_v50 = vsel %vm729_vm0, %v2378_v38, 0 }
 0x323   : > { %v1247_v34 = vadd.f32 %v1243_v39, %v3819_v63  ;;  %v1278_v37 = vadd.f32 %v1243_v39, %v3438_v35  ;;  %v1301_v58 = vadd.f32 %v1243_v39, %v3820_v59  ;;  %v1279_v47 = vmax.f32 %v1277_v32, 0.0  ;;  %2651 = vmatpush3.bf16.msra.mxu1 %v1429_v50 }
 0x324   : > { %v1248_v56 = vmax.f32 %v1246_v55, 0.0  ;;  %v1302_v43 = vmax.f32 %v1300_v49, 0.0  ;;  %2554 = vmatprep.subr.bf16.mxu1 %v3194_v1 }
 0x325   : > { %v1280_v36 = vmax.f32 %v1278_v37, 0.0  ;;  %v1249_v52 = vmax.f32 %v1247_v34, 0.0  ;;  %v1303_v57 = vmax.f32 %v1301_v58, 0.0 }
 0x327   : > { %v2860_v41 = vpack.i.bf16 %v1280_v36, %v1279_v47  ;;  %v2865_v61 = vpack.i.bf16 %v1303_v57, %v1302_v43  ;;  %v2870_v33 = vpack.i.bf16 %v1249_v52, %v1248_v56 }
 0x329   : > { %2861 = vrot.lane.b32.xlu0 %v2860_v41, %s3073_s29  ;;  %2856 = vrot.lane.b32.xlu1 %v2860_v41, %s3072_s16 }
 0x32d   : > { %2866 = vrot.lane.b32.xlu1 %v2865_v61, %s3072_s16  ;;  %2871 = vrot.lane.b32.xlu0 %v2870_v33, %s3072_s16 }
 0x331   : > { %2876 = vrot.lane.b32.xlu1 %v2870_v33, %s3073_s29  ;;  %2881 = vrot.lane.b32.xlu0 %v2870_v33, %s3074_s30 }
 0x39b   : > { %v2862_v62 = vpop.permute.xlu0 %2861  ;;  %v2857_v39 = vpop.permute.xlu1 %2856 }
 0x39c   : > { %v2859_v32 = vunpack.i.h.bf16 %v2857_v39  ;;  %v2858_v34 = vunpack.i.l.bf16 %v2857_v39  ;;  %v2864_v37 = vunpack.i.h.bf16 %v2862_v62  ;;  %v2863_v58 = vunpack.i.l.bf16 %v2862_v62 }
 0x39e   : > { %v1290_v55 = vmax.f32 %v1280_v36, %v2859_v32  ;;  %v1289_v49 = vmax.f32 %v1279_v47, %v2858_v34 }
 0x39f   : > { %v2867_v41 = vpop.permute.xlu1 %2866  ;;  %v2872_v42 = vpop.permute.xlu0 %2871 }
 0x3a0   : > { %v1298_v53 = vmax.f32 %v1290_v55, %v2864_v37  ;;  %v1297_v61 = vmax.f32 %v1289_v49, %v2863_v58  ;;  %v2869_v33 = vunpack.i.h.bf16 %v2867_v41  ;;  %v2868_v59 = vunpack.i.l.bf16 %v2867_v41  ;;  %v3821_v55 = vld [vmem:[#allocation6_spill] sm:$0xff] }
 0x3a1   : > { %v2874_v63 = vunpack.i.h.bf16 %v2872_v42  ;;  %v2873_v35 = vunpack.i.l.bf16 %v2872_v42 }
 0x3a2   : > { %v1313_v38 = vmax.f32 %v1303_v57, %v2869_v33  ;;  %v1312_v50 = vmax.f32 %v1302_v43, %v2868_v59  ;;  %v1299_v60 = vpack.c.bf16 %v1298_v53, %v1297_v61  ;;  %v1485_v43 = vld [vmem:[%s3372_s15 + $0x88] sm:$0xff] }
 0x3a3   : > { %v2877_v1 = vpop.permute.xlu1 %2876  ;;  %v2882_v48 = vpop.permute.xlu0 %2881  ;;  %v1259_v46 = vmax.f32 %v1249_v52, %v2874_v63  ;;  %v1258_v39 = vmax.f32 %v1248_v56, %v2873_v35  ;;  %v2376_v63 = vld [vmem:[%s3787_s4 + $0x4] sm:$0x7]  ;;  %v1478_v52 = vld [vmem:[%s3372_s15 + $0x38] sm:$0xff] }
 0x3a4   : > { %v2879_v62 = vunpack.i.h.bf16 %v2877_v1  ;;  %v2878_v36 = vunpack.i.l.bf16 %v2877_v1  ;;  %1369 = vrot.lane.b32.xlu1 %v1299_v60, %s3076_s14  ;;  %v1314_v47 = vpack.c.bf16 %v1313_v38, %v1312_v50  ;;  %v2884_v37 = vunpack.i.h.bf16 %v2882_v48  ;;  %v1484_v60 = vld [vmem:[%s3372_s15 + $0x80] sm:$0xff] }
 0x3a5   : > { %v2883_v58 = vunpack.i.l.bf16 %v2882_v48  ;;  %v1490_v48 = vpack.c.bf16 %v1484_v60, %v1478_v52  ;;  %v1479_v56 = vld [vmem:[%s3372_s15 + $0x40] sm:$0xff]  ;;  %v3826_v60 = vld [vmem:[#allocation9_spill] sm:$0xff] }
 0x3a6   : > { %v1266_v32 = vmax.f32 %v1258_v39, %v2878_v36  ;;  %v1267_v34 = vmax.f32 %v1259_v46, %v2879_v62  ;;  %1423 = vrot.lane.b32.xlu0 %v1314_v47, %s3075_s13  ;;  %v1375_v46 = vsel %vm729_vm0, %v2376_v63, 0 }
 0x3a8   : > { %v1274_v59 = vmax.f32 %v1266_v32, %v2883_v58  ;;  %v1275_v35 = vmax.f32 %v1267_v34, %v2884_v37  ;;  %1500 = vrot.lane.b32.xlu1 %v3430_v51, %s3078_s28  ;;  %v1491_v51 = vpack.c.bf16 %v1485_v43, %v1479_v56  ;;  %v3828_v43 = vld [vmem:[#allocation10_spill] sm:$0xff] }
 0x3aa   : > { %v1276_v57 = vpack.c.bf16 %v1275_v35, %v1274_v59  ;;  %1502 = vrot.lane.b32.xlu0 %v3471_v0, %s3078_s28 }
 0x3ac   : > { %2641 = vmatmul.mubr.msk.bf16.vlgmr.msra.gmra.mrb[20].mxu0 %vm933_vm3, %v1276_v57  ;;  %1498 = vrot.lane.b32.xlu1 %v3395_v40, %s3078_s28 }
 0x3ad   : > { %2645 = vmatpush3.bf16.msra.mxu0 %v1375_v46  ;;  %2646 = vmatprep.mubr.msk.bf16.mxu0 %vm3071_vm1, %v3816_v44  ;;  %v3827_v46 = vld [vmem:[#allocation11_spill] sm:$0xff] }
 0x3ae   : > { %2532 = vmatprep.subr.bf16.mxu0 %v3821_v55  ;;  %1504 = vrot.lane.b32.xlu0 %v3480_v54, %s3078_s28 }
 0x3b0   : > { %1506 = vrot.lane.b32.xlu1 %v1490_v48, %s3078_s28 }
 0x3b2   : > { %1508 = vrot.lane.b32.xlu0 %v1491_v51, %s3078_s28  ;;  %s2329_s28 = sshll.u32 %s405_s27, 4 }
 0x3b3   : > { %s3738_s12 = scalar_lea.vmem [#allocation4], %s2329_s28  }
 0x416   : > { %v1370_v49 = vpop.permute.xlu1 %1369 }
 0x417   : > { %2647 = vmatmul.mubr.msk.bf16.vlgmr.msra.gmra.mrb[24].mxu0 %vm933_vm3, %v1370_v49 }
 0x418   : > { %2533 = vmatpush3.bf16.msra.mxu0 %v3200_v2  ;;  %v1424_v40 = vpop.permute.xlu0 %1423 }
 0x419   : > { %2534 = vmatprep.subr.bf16.mxu0 %v3212_v4  ;;  %2653 = vmatmul.mubr.msk.bf16.vlgmr.msra.gmra.mrb[16].mxu1 %vm933_vm3, %v1424_v40 }
 0x41a   : > { %v1501_v0 = vpop.permute.xlu1 %1500  ;;  %2555 = vmatpush3.bf16.msra.mxu1 %v3206_v3 }
 0x41b   : > { %2556 = vmatprep.subr.bf16.mxu1 %v3218_v5 }
 0x41c   : > { %2535 = vmatpush3.bf16.msra.mxu0 %v3224_v6  ;;  %v1503_v54 = vpop.permute.xlu0 %1502 }
 0x41d   : > { %2536 = vmatprep.subr.bf16.mxu0 %v3236_v8  ;;  %v1512_v42 = vsel %vm1510_vm5, %v1501_v0, %v1503_v54 }
 0x41e   : > { %v1499_v41 = vpop.permute.xlu1 %1498  ;;  %2557 = vmatpush3.bf16.msra.mxu1 %v3230_v7  ;;  %1555 = vmatprep.mubr.bf16.mxu0 %v1512_v42  ;;  %v3822_v7 = vld [vmem:[#allocation7_spill] sm:$0xff] }
 0x41f   : > { %2558 = vmatprep.subr.bf16.mxu1 %v3242_v9  ;;  %v1511_v5 = vsel %vm1510_vm5, %v1499_v41, %v1501_v0  ;;  %v3823_v9 = vld [vmem:[#allocation8_spill] sm:$0xff] }
 0x420   : > { %2537 = vmatpush3.bf16.msra.mxu0 %v3248_v10  ;;  %v1505_v2 = vpop.permute.xlu0 %1504 }
 0x421   : > { %2538 = vmatprep.subr.bf16.mxu0 %v3260_v12  ;;  %v1513_v6 = vsel %vm1510_vm5, %v1503_v54, %v1505_v2  ;;  %v3824_v12 = vld [vmem:[#allocation12_spill] sm:$0xff] }
 0x422   : > { %v1507_v3 = vpop.permute.xlu1 %1506  ;;  %2559 = vmatpush3.bf16.msra.mxu1 %v3254_v11 }
 0x423   : > { %v1514_v4 = vsel %vm1510_vm5, %v1505_v2, %v1507_v3  ;;  %2560 = vmatprep.subr.bf16.mxu1 %v3266_v13  ;;  %v2381_v2 = vld [vmem:[%s3786_s3 + $0x8] sm:$0x7] }
 0x424   : > { %2539 = vmatpush3.bf16.msra.mxu0 %v3272_v14  ;;  %1596 = vmatprep.mubr.bf16.mxu1 %v1514_v4  ;;  %v1509_v8 = vpop.permute.xlu0 %1508 }
 0x425   : > { %2540 = vmatprep.subr.bf16.mxu0 %v3287_v16  ;;  %v1515_v10 = vsel %vm1510_vm5, %v1507_v3, %v1509_v8  ;;  %v3825_v16 = vld [vmem:[#allocation13_spill] sm:$0xff]  ;;  %v2385_v8 = vld [vmem:[%s3788_s5 + $0x8] sm:$0x7] }
 0x426   : > { %2561 = vmatpush3.bf16.msra.mxu1 %v3281_v15 }
 0x427   : > { %2562 = vmatprep.subr.bf16.mxu1 %v3293_v17 }
 0x428   : > { %2541 = vmatpush3.bf16.msra.mxu0 %v3300_v18 }
 0x429   : > { %2542 = vmatprep.subr.bf16.mxu0 %v3312_v20 }
 0x42a   : > { %2563 = vmatpush3.bf16.msra.mxu1 %v3306_v19 }
 0x42b   : > { %2564 = vmatprep.subr.bf16.mxu1 %v3318_v21 }
 0x42c   : > { %2543 = vmatpush3.bf16.msra.mxu0 %v3325_v22 }
 0x42d   : > { %2544 = vmatprep.subr.bf16.mxu0 %v3337_v24 }
 0x42e   : > { %2565 = vmatpush3.bf16.msra.mxu1 %v3331_v23 }
 0x42f   : > { %2566 = vmatprep.subr.bf16.mxu1 %v3343_v25 }
 0x430   : > { %2545 = vmatpush3.bf16.msra.mxu0 %v3349_v26 }
 0x431   : > { %2546 = vmatprep.subr.bf16.mxu0 %v3361_v28 }
 0x432   : > { %2567 = vmatpush3.bf16.msra.mxu1 %v3355_v27 }
 0x433   : > { %2568 = vmatprep.subr.bf16.mxu1 %v3367_v29 }
 0x434   : > { %2547 = vmatpush3.bf16.msra.mxu0 %v3378_v30 }
 0x435   : > { %2656 = vmatprep.subr.bf16.mxu0 %v3816_v44 }
 0x436   : > { %2569 = vmatpush3.bf16.msra.mxu1 %v3384_v31 }
 0x437   : > { %1556 = vmatmul.mubr.bf16.vlgmr.msra.gmra.mrb[28].mxu0 %v1511_v5  ;;  %2666 = vmatprep.subr.bf16.mxu1 %v3816_v44  ;;  %v1721_v5 = vsel %vm729_vm0, %v2381_v2, 0 }
 0x438   : > { %2657 = vmatpush3.bf16.msra.mxu0 %v3405_v45  ;;  %2662 = vmatprep.mubr.msk.bf16.mxu0 %vm3071_vm1, %v3816_v44 }
 0x439   : > { %2658 = vmatprep.subr.bf16.mxu0 %v3816_v44  ;;  %1597 = vmatmul.mubr.bf16.vlgmr.msra.gmra.mrb[20].mxu1 %v1513_v6 }
 0x43a   : > { %2668 = vmatprep.mubr.msk.bf16.mxu1 %vm3071_vm1, %v3816_v44  ;;  %2667 = vmatpush3.bf16.msra.mxu1 %v1721_v5 }
 0x43b   : > { %2672 = vmatprep.subr.bf16.mxu1 %v3816_v44 }
 0x43c   : > { %2659 = vmatpush3.bf16.msra.mxu0 %v3822_v7 }
 0x43d   : > { %2660 = vmatprep.subr.bf16.mxu0 %v3816_v44 }
 0x440   : > { %2661 = vmatpush3.bf16.msra.mxu0 %v3823_v9  ;;  %v1829_v9 = vsel %vm729_vm0, %v2385_v8, 0 }
 0x441   : > { %2678 = vmatprep.subr.bf16.mxu0 %v3816_v44 }
 0x443   : > { %2663 = vmatmul.mubr.msk.bf16.vlgmr.msra.gmra.mrb[32].mxu0 %vm725_vm2, %v1515_v10 }
 0x444   : > { %2680 = vmatprep.mubr.msk.bf16.mxu0 %vm3071_vm1, %v3816_v44  ;;  %2679 = vmatpush3.bf16.msra.mxu0 %v1829_v9  ;;  %v2387_v9 = vld [vmem:[%s3789_s6] ss:$0 sm:$0xff] }
 0x445   : > { %2704 = vmatprep.subr.bf16.mxu0 %v3816_v44 }
 0x47f   : > { %v1357_v11 = vpop.f32.mrb[20].mxu0 }
 0x480   : > { %v1364_v13 = vadd.f32 %v1357_v11, %v3824_v12  ;;  %v2642_v14 = vpop.f32.mrb[21].mxu0 }
 0x481   : > { %v1360_v15 = vpop.f32.mrb[22].mxu0 }
 0x482   : > { %v1365_v17 = vadd.f32 %v1360_v15, %v3825_v16  ;;  %v2643_v18 = vpop.f32.mrb[23].mxu0 }
 0x4ea   : > { %v1411_v19 = vpop.f32.mrb[24].mxu0 }
 0x4eb   : > { %v1418_v20 = vadd.f32 %v1411_v19, %v1364_v13  ;;  %v2648_v21 = vpop.f32.mrb[25].mxu0 }
 0x4ec   : > { %v1414_v22 = vpop.f32.mrb[26].mxu0  ;;  %v1465_v24 = vpop.f32.mrb[16].mxu1 }
 0x4ed   : > { %v1419_v23 = vadd.f32 %v1414_v22, %v1365_v17  ;;  %v2649_v25 = vpop.f32.mrb[27].mxu0  ;;  %v3638_v26 = vadd.f32 %v1465_v24, %v1418_v20  ;;  %v2654_v27 = vpop.f32.mrb[17].mxu1 }
 0x4ee   : > { %v1468_v28 = vpop.f32.mrb[18].mxu1 }
 0x4ef   : > { %v3640_v29 = vadd.f32 %v1468_v28, %v1419_v23  ;;  %v2655_v30 = vpop.f32.mrb[19].mxu1 }
 0x50a   : > { %v2548_v31 = vpop.f32.mrb[28].mxu0 }
 0x50b   : > { %v2549_v45 = vpop.f32.mrb[29].mxu0 }
 0x50c   : > { %v2550_v53 = vadd.f32 %v2549_v45, %v2548_v31  ;;  %v2551_v61 = vpop.f32.mrb[30].mxu0  ;;  %v2570_v33 = vpop.f32.mrb[20].mxu1 }
 0x50d   : > { %v2552_v38 = vpop.f32.mrb[31].mxu0  ;;  %v2571_v1 = vpop.f32.mrb[21].mxu1 }
 0x50e   : > { %v2553_v50 = vadd.f32 %v2552_v38, %v2551_v61  ;;  %v2572_v39 = vadd.f32 %v2571_v1, %v2570_v33  ;;  %v2573_v62 = vpop.f32.mrb[22].mxu1 }
 0x50f   : > { %v2574_v36 = vpop.f32.mrb[23].mxu1 }
 0x510   : > { %v2575_v47 = vadd.f32 %v2574_v36, %v2573_v62  ;;  %v1599_v32 = vadd.f32 %v2572_v39, %v2550_v53 }
 0x512   : > { %v1602_v34 = vadd.f32 %v2575_v47, %v2553_v50  ;;  %v2383_v47 = vld [vmem:[%s3787_s4 + $0x8] sm:$0x7] }
 0x516   : > { %v1639_v37 = vpop.f32.mrb[32].mxu0 }
 0x517   : > { %v1640_v58 = vadd.f32 %v1639_v37, %v1599_v32  ;;  %v2664_v63 = vpop.f32.mrb[33].mxu0 }
 0x518   : > { %v1642_v59 = vpop.f32.mrb[34].mxu0  ;;  %v2950_v63 = vld [vmem:[%s3790_s7] sm:$0xff]  }
 0x519   : > { %v1643_v35 = vadd.f32 %v1642_v59, %v1602_v34  ;;  %v2665_v52 = vpop.f32.mrb[35].mxu0  ;;  %v1677_v57 = vadd.f32 %v1640_v58, %v3826_v60  ;;  %v1646_v51 = vadd.f32 %v1640_v58, %v3827_v46  ;;  %v1700_v40 = vadd.f32 %v1640_v58, %v3828_v43 }
 0x51a   : > { %v1775_v58 = vsel %vm729_vm0, %v2383_v47, 0 }
 0x51b   : > { %v1647_v48 = vadd.f32 %v1643_v35, %v3827_v46  ;;  %v1678_v56 = vadd.f32 %v1643_v35, %v3826_v60  ;;  %v1701_v55 = vadd.f32 %v1643_v35, %v3828_v43  ;;  %v1679_v49 = vmax.f32 %v1677_v57, 0.0  ;;  %v2951_v35 = vld [vmem:[%s3790_s7 + $0x8] sm:$0xff]   ;;  %v2952_v60 = vld [vmem:[%s3790_s7 + $0x10] sm:$0xff]   ;;  %v2953_v57 = vld [vmem:[%s3790_s7 + $0x18] sm:$0xff]  }
 0x51c   : > { %v1648_v3 = vmax.f32 %v1646_v51, 0.0  ;;  %v1702_v4 = vmax.f32 %v1700_v40, 0.0  ;;  %v2954_v46 = vld [vmem:[%s3790_s7 + $0x20] sm:$0xff]   ;;  %v2957_v43 = vld [vmem:[%s3790_s7 + $0x38] ss:$0 sps:$4 sm:$0xff]  }
 0x51d   : > { %v1680_v0 = vmax.f32 %v1678_v56, 0.0  ;;  %v1649_v54 = vmax.f32 %v1647_v48, 0.0  ;;  %v1703_v41 = vmax.f32 %v1701_v55, 0.0  ;;  %v2955_v48 = vld [vmem:[%s3790_s7 + $0x28] sm:$0xff]   ;;  %v2956_v56 = vld [vmem:[%s3790_s7 + $0x30] sm:$0xff]   ;;  %v1959_v55 = vsel %vm1957_vm6, %v2957_v43, 0 }
 0x51e   : > { %v2958_v51 = vld [vmem:[%s3792_s9] sm:$0xff]  }
 0x51f   : > { %v2890_v42 = vpack.i.bf16 %v1680_v0, %v1679_v49  ;;  %v2895_v6 = vpack.i.bf16 %v1703_v41, %v1702_v4  ;;  %v2900_v7 = vpack.i.bf16 %v1649_v54, %v1648_v3 }
 0x521   : > { %2891 = vrot.lane.b32.xlu0 %v2890_v42, %s3073_s29  ;;  %2886 = vrot.lane.b32.xlu1 %v2890_v42, %s3072_s16 }
 0x525   : > { %2896 = vrot.lane.b32.xlu1 %v2895_v6, %s3072_s16  ;;  %2901 = vrot.lane.b32.xlu0 %v2900_v7, %s3072_s16 }
 0x529   : > { %2906 = vrot.lane.b32.xlu1 %v2900_v7, %s3073_s29  ;;  %2911 = vrot.lane.b32.xlu0 %v2900_v7, %s3074_s30  ;;  %s3749_s30 = scalar_lea.vmem (%p3164_p4), %s3794_s11, %s2421_s22  }
 0x593   : > { %v2892_v10 = vpop.permute.xlu0 %2891  ;;  %v2887_v11 = vpop.permute.xlu1 %2886 }
 0x594   : > { %v2889_v12 = vunpack.i.h.bf16 %v2887_v11  ;;  %v2888_v13 = vunpack.i.l.bf16 %v2887_v11  ;;  %v2894_v14 = vunpack.i.h.bf16 %v2892_v10  ;;  %v2893_v15 = vunpack.i.l.bf16 %v2892_v10 }
 0x596   : > { %v1690_v16 = vmax.f32 %v1680_v0, %v2889_v12  ;;  %v1689_v17 = vmax.f32 %v1679_v49, %v2888_v13  ;;  %v2959_v49 = vld [vmem:[%s3792_s9 + $0x8] sm:$0xff]  }
 0x597   : > { %v2897_v18 = vpop.permute.xlu1 %2896  ;;  %v2902_v19 = vpop.permute.xlu0 %2901 }
 0x598   : > { %v1698_v20 = vmax.f32 %v1690_v16, %v2894_v14  ;;  %v1697_v21 = vmax.f32 %v1689_v17, %v2893_v15  ;;  %v2899_v22 = vunpack.i.h.bf16 %v2897_v18  ;;  %v2898_v23 = vunpack.i.l.bf16 %v2897_v18 }
 0x599   : > { %v2904_v24 = vunpack.i.h.bf16 %v2902_v19  ;;  %v2903_v25 = vunpack.i.l.bf16 %v2902_v19  ;;  %v2960_v19 = vld [vmem:[%s3792_s9 + $0x10] sm:$0xff]  }
 0x59a   : > { %v1713_v27 = vmax.f32 %v1703_v41, %v2899_v22  ;;  %v1712_v28 = vmax.f32 %v1702_v4, %v2898_v23  ;;  %v1699_v30 = vpack.c.bf16 %v1698_v20, %v1697_v21  ;;  %v2961_v20 = vld [vmem:[%s3792_s9 + $0x18] ss:$0 sps:$4 sm:$0x11]   ;;  %v2388_v22 = vld [vmem:[%s3791_s8] ss:$0 sm:$0xff] }
 0x59b   : > { %v2907_v31 = vpop.permute.xlu1 %2906  ;;  %v2912_v45 = vpop.permute.xlu0 %2911  ;;  %v1659_v53 = vmax.f32 %v1649_v54, %v2904_v24  ;;  %v1658_v61 = vmax.f32 %v1648_v3, %v2903_v25  ;;  %v2046_v21 = vsel %vm2044_vm8, %v2961_v20, 0 }
 0x59c   : > { %v2909_v33 = vunpack.i.h.bf16 %v2907_v31  ;;  %v2908_v38 = vunpack.i.l.bf16 %v2907_v31  ;;  %1769 = vrot.lane.b32.xlu1 %v1699_v30, %s3076_s14  ;;  %v1714_v50 = vpack.c.bf16 %v1713_v27, %v1712_v28  ;;  %v2914_v62 = vunpack.i.h.bf16 %v2912_v45 }
 0x59d   : > { %v2913_v36 = vunpack.i.l.bf16 %v2912_v45 }
 0x59e   : > { %v1666_v1 = vmax.f32 %v1658_v61, %v2908_v38  ;;  %v1667_v39 = vmax.f32 %v1659_v53, %v2909_v33  ;;  %1823 = vrot.lane.b32.xlu0 %v1714_v50, %s3075_s13  ;;  %v2398_v53 = vld [vmem:[%s3793_s10] ss:$0 sm:$0xff] }
 0x5a0   : > { %v1674_v32 = vmax.f32 %v1666_v1, %v2913_v36  ;;  %v1675_v34 = vmax.f32 %v1667_v39, %v2914_v62 }
 0x5a2   : > { %v1676_v37 = vpack.c.bf16 %v1675_v34, %v1674_v32 }
 0x5a4   : > { %2669 = vmatmul.mubr.msk.bf16.vlgmr.msra.gmra.mrb[24].mxu1 %vm933_vm3, %v1676_v37 }
 0x5a5   : > { %2673 = vmatpush3.bf16.msra.mxu1 %v1775_v58  ;;  %2674 = vmatprep.mubr.msk.bf16.mxu1 %vm3071_vm1, %v3816_v44 }
 0x5a6   : > { %2684 = vmatprep.subr.bf16.mxu1 %v3816_v44 }
 0x60e   : > { %v1770_v59 = vpop.permute.xlu1 %1769 }
 0x60f   : > { %2675 = vmatmul.mubr.msk.bf16.vlgmr.msra.gmra.mrb[28].mxu1 %vm933_vm3, %v1770_v59 }
 0x610   : > { %2685 = vmatpush3.bf16.msra.mxu1 %v2950_v63  ;;  %2700 = vmatprep.mubr.msk.bf16.mxu1 %vm3071_vm1, %v3816_v44  ;;  %v1824_v52 = vpop.permute.xlu0 %1823 }
 0x611   : > { %2686 = vmatprep.subr.bf16.mxu1 %v3816_v44  ;;  %2681 = vmatmul.mubr.msk.bf16.vlgmr.msra.gmra.mrb[36].mxu0 %vm933_vm3, %v1824_v52 }
 0x612   : > { %2712 = vmatprep.mubr.msk.bf16.mxu0 %vm3071_vm1, %v3816_v44  ;;  %2705 = vmatpush3.bf16.msra.mxu0 %v2958_v51 }
 0x613   : > { %2706 = vmatprep.subr.bf16.mxu0 %v3816_v44 }
 0x614   : > { %2687 = vmatpush3.bf16.msra.mxu1 %v2951_v35 }
 0x615   : > { %2688 = vmatprep.subr.bf16.mxu1 %v3816_v44 }
 0x616   : > { %2707 = vmatpush3.bf16.msra.mxu0 %v2959_v49 }
 0x617   : > { %2708 = vmatprep.subr.bf16.mxu0 %v3816_v44 }
 0x618   : > { %2689 = vmatpush3.bf16.msra.mxu1 %v2952_v60 }
 0x619   : > { %2690 = vmatprep.subr.bf16.mxu1 %v3816_v44 }
 0x61a   : > { %2709 = vmatpush3.bf16.msra.mxu0 %v2960_v19 }
 0x61b   : > { %2710 = vmatprep.subr.bf16.mxu0 %v3816_v44 }
 0x61c   : > { %2691 = vmatpush3.bf16.msra.mxu1 %v2953_v57 }
 0x61d   : > { %2692 = vmatprep.subr.bf16.mxu1 %v3816_v44 }
 0x61e   : > { %2711 = vmatpush3.bf16.msra.mxu0 %v2046_v21 }
 0x620   : > { %2693 = vmatpush3.bf16.msra.mxu1 %v2954_v46 }
 0x621   : > { %2694 = vmatprep.subr.bf16.mxu1 %v3816_v44 }
 0x624   : > { %2695 = vmatpush3.bf16.msra.mxu1 %v2955_v48 }
 0x625   : > { %2696 = vmatprep.subr.bf16.mxu1 %v3816_v44 }
 0x628   : > { %2697 = vmatpush3.bf16.msra.mxu1 %v2956_v56 }
 0x629   : > { %2698 = vmatprep.subr.bf16.mxu1 %v3816_v44 }
 0x62c   : > { %2699 = vmatpush3.bf16.msra.mxu1 %v1959_v55 }
 0x677   : > { %v1757_v40 = vpop.f32.mrb[24].mxu1 }
 0x678   : > { %v1764_v0 = vadd.f32 %v1757_v40, %v3638_v26  ;;  %v2670_v54 = vpop.f32.mrb[25].mxu1 }
 0x679   : > { %v1760_v41 = vpop.f32.mrb[26].mxu1 }
 0x67a   : > { %v1765_v42 = vadd.f32 %v1760_v41, %v3640_v29  ;;  %v2671_v2 = vpop.f32.mrb[27].mxu1 }
 0x6e2   : > { %v1811_v3 = vpop.f32.mrb[28].mxu1 }
 0x6e3   : > { %v1818_v4 = vadd.f32 %v1811_v3, %v1764_v0  ;;  %v2676_v5 = vpop.f32.mrb[29].mxu1 }
 0x6e4   : > { %v1814_v6 = vpop.f32.mrb[30].mxu1  ;;  %v1865_v8 = vpop.f32.mrb[36].mxu0 }
 0x6e5   : > { %v1819_v7 = vadd.f32 %v1814_v6, %v1765_v42  ;;  %v2677_v10 = vpop.f32.mrb[31].mxu1  ;;  %v1872_v11 = vadd.f32 %v1865_v8, %v1818_v4  ;;  %v2682_v12 = vpop.f32.mrb[37].mxu0 }
 0x6e6   : > { %v1868_v13 = vpop.f32.mrb[38].mxu0 }
 0x6e7   : > { %v1881_v26 = vadd.f32 %v2387_v9, %v1872_v11  ;;  %v1873_v14 = vadd.f32 %v1868_v13, %v1819_v7  ;;  %v2683_v15 = vpop.f32.mrb[39].mxu0 }
 0x6e9   : > { %v1882_v16 = vadd.f32 %v2387_v9, %v1873_v14  ;;  %v1883_v29 = vmax.f32 %v1881_v26, 0.0 }
 0x6eb   : > { %v1884_v17 = vmax.f32 %v1882_v16, 0.0 }
 0x6ed   : > { %v1885_v18 = vpack.c.bf16 %v1884_v17, %v1883_v29 }
 0x6ef   : > { %2701 = vmatmul.mubr.msk.bf16.vlgmr.msra.gmra.mrb[32].mxu1 %vm1953_vm7, %v1885_v18 }
 0x7c2   : > { %v1995_v23 = vpop.f32.mrb[32].mxu1 }
 0x7c3   : > { %v1996_v24 = vadd.f32 %v2388_v22, %v1995_v23  ;;  %v2702_v25 = vpop.f32.mrb[33].mxu1 }
 0x7c4   : > { %v1998_v27 = vpop.f32.mrb[34].mxu1 }
 0x7c5   : > { %v1999_v28 = vadd.f32 %v2388_v22, %v1998_v27  ;;  %v2703_v30 = vpop.f32.mrb[35].mxu1  ;;  %v2002_v31 = vmax.f32 %v1996_v24, 0.0 }
 0x7c7   : > { %v2003_v44 = vmax.f32 %v1999_v28, 0.0 }
 0x7c9   : > { %v2004_v45 = vpack.c.bf16 %v2003_v44, %v2002_v31 }
 0x7cb   : > { %2713 = vmatmul.mubr.msk.bf16.vlgmr.msra.gmra.mrb[40].mxu0 %vm2040_vm9, %v2004_v45 }
 0x89d   : > { %2098 = sbr.rel (!%p3164_p4) target bundleno = 2261 (0x8d5), region = 72 }
 0x89e   : > { %v2082_v61 = vpop.f32.mrb[40].mxu0 }
 0x89f   : > { %v2083_v33 = vadd.f32 %v2398_v53, %v2082_v61  ;;  %v2714_v38 = vpop.f32.mrb[41].mxu0 }
 0x8a0   : > { %v2085_v50 = vpop.f32.mrb[42].mxu0 }
 0x8a1   : > { %2090 = vst.msk [vmem:[%s3738_s12] sm:$0xff] %vm2089_vm10, %v2083_v33  ;;  %v2086_v1 = vadd.f32 %v2398_v53, %v2085_v50  ;;  %v2715_v39 = vpop.f32.mrb[43].mxu0 }
 0x8a3   : > { %2091 = vst.msk [vmem:[%s3738_s12 + $0x8] sm:$0xff] %vm2089_vm10, %v2086_v1 }
 0x8a4   : > { %s3833_s17 = smov (!%p2101_p6, %s2100_s17), 2 }
 0x8a5   : > { %s2406_s14 = sshll.u32 %s3833_s17, 7 }
 0x8a6   : > { %p2409_p7 = scmp.eq.s32.totalorder %s2406_s14, 0 }
 0x8a7   : > { %s3755_s13 = sshrl.u32 (!%p2409_p7), %s3833_s17, 1 }
 0x8a8   : > { %2109 = sbr.rel (%p2409_p7) target bundleno = 2261 (0x8d5), region = 76  ;;  %p2410_p4 = scmp.le.s32.totalorder (!%p2409_p7), %s3755_s13, 0 }
 0x8af   : > { %2270 = sbr.rel (%p2410_p4) target bundleno = 2240 (0x8c0), region = 159  ;;  %s3037_s20 = smov (!%p2410_p4), %s3749_s30  }
 0x8b0   : > { %s3041_s25 = smov (!%p2410_p4), %s3738_s12   ;;  %s3045_s19 = smov (!%p2410_p4), 0  }
 0x8b1   : > { %s3049_s23 = smov (!%p2410_p4), 0  }
 0x8b6 LB: >> { %v2173_v62 = vld [vmem:[%s3043_s25] sm:$0xff]  ;;  %v2175_v36 = vld [vmem:[%s3043_s25 + $0x8] sm:$0xff]  ;;  %s2177_s27 = sadd.s32 1, %s3047_s19  ;;  %s2167_s23 = sadd.s32 1, %s3051_s23   ;;  %s3051_s23 = sphi %s3049_s23, %s2167_s23   ;;  %s3047_s19 = sphi %s3045_s19, %s3046_s19   ;;  %s3043_s25 = sphi %s3041_s25, %s2182_s25   ;;  %s3039_s20 = sphi %s3037_s20, %s2183_s20  }
 0x8b7   : >> { %2174 = vst [vmem:[%s3039_s20] sm:$0xff] %v2173_v62  ;;  %2176 = vst [vmem:[%s3039_s20 + $0x8] sm:$0xff] %v2175_v36  ;;  %p2178_p8 = scmp.ge.s32.totalorder %s2177_s27, %s3755_s13  ;;  %p2166_p9 = scmp.ge.s32.totalorder %s2167_s23, %s3755_s13 }
 0x8b9   : >> { %s3835_s27 = smov (%p2178_p8, %s2177_s27), 0  ;;  %2169 = sbr.rel (!%p2166_p9) target bundleno = 2230 (0x8b6), region = 165 }
 0x8ba   : >> { %s2411_s28 = sshll.u32 %s3835_s27, 4  ;;  %s3046_s19 = smov %s3835_s27  }
 0x8bb   : >> { %s2182_s25 = scalar_lea.vmem %s3738_s12, %s2411_s28 [#allocation4]   ;;  %s2183_s20 = scalar_lea.vmem %s3749_s30, %s2411_s28  }
 0x8c0 PF: > { %s3765_s15 = sand.u32 1, %s3833_s17   ;;  %s2422_s26 = sshll.u32 %s3755_s13, 4 }
 0x8c1   : > { %s2188_s22 = scalar_lea.vmem %s3738_s12, %s2422_s26 [#allocation4]   ;;  %s2190_s16 = scalar_lea.vmem %s3749_s30, %s2422_s26  }
 0x8c2   : > { %p2416_p10 = scmp.le.s32.totalorder %s3765_s15, 0 }
 0x8c3   : > { %s3053_s29 = smov (!%p2416_p10), %s2190_s16   ;;  %s3057_s14 = smov (!%p2416_p10), %s2188_s22  }
 0x8c4   : > { %2284 = sbr.rel (%p2416_p10) target bundleno = 2261 (0x8d5), region = 170  ;;  %s3061_s20 = smov (!%p2416_p10), 0  }
 0x8c5   : > { %s3065_s25 = smov (!%p2416_p10), 0  }
 0x8cb LB: >> { %v2200_v47 = vld [vmem:[%s3059_s14] sm:$0xff]  ;;  %s2202_s17 = sadd.s32 1, %s3063_s20  ;;  %s2194_s25 = sadd.s32 1, %s3067_s25   ;;  %s3067_s25 = sphi %s3065_s25, %s2194_s25   ;;  %s3063_s20 = sphi %s3061_s20, %s3062_s20   ;;  %s3059_s14 = sphi %s3057_s14, %s2207_s14   ;;  %s3055_s29 = sphi %s3053_s29, %s2208_s29  }
 0x8cc   : >> { %2201 = vst [vmem:[%s3055_s29] sm:$0xff] %v2200_v47  ;;  %p2203_p11 = scmp.ge.s32.totalorder %s2202_s17, %s3765_s15  ;;  %p2193_p12 = scmp.ge.s32.totalorder %s2194_s25, %s3765_s15 }
 0x8ce   : >> { %s3837_s17 = smov (%p2203_p11, %s2202_s17), 0  ;;  %2196 = sbr.rel (!%p2193_p12) target bundleno = 2251 (0x8cb), region = 176 }
 0x8cf   : >> { %s2417_s12 = sshll.u32 %s3837_s17, 3  ;;  %s3062_s20 = smov %s3837_s17  }
 0x8d0   : >> { %s2207_s14 = scalar_lea.vmem %s2188_s22, %s2417_s12 [#allocation4]   ;;  %s2208_s29 = scalar_lea.vmem %s2190_s16, %s2417_s12  }
 0x8d5 PF: > { %p19_p13 = scmp.ge.s32.totalorder %s3154_s21, 4   ;;  %s3829_s17 = smov %s3031_s18 }
 0x8d6   : > { %s3830_s18 = smov %s3162_s24  ;;  %s3831_s19 = smov %s3154_s21 }
 0x8d7   :  { %21 = sbr.rel (!%p19_p13) target bundleno = 2 (0x2), region = 187 }
 0x8de   :  { %2224 = vsyncpa [#allocation3], 1 }
 0x8df   :  { %2226 = vsyncpa [#allocation3 + $0x1], 1 }

</bundles_post_ra>
